<compile_context>
chip_gen: v7x
topology: tpu7x:2x2x1
jax: 0.10.0
libtpu: 0.0.40
codegen_flags: <defaults>
</compile_context>

<pallas_src>
import functools

import jax
import jax.numpy as jnp
from jax.experimental import pallas as pl
from jax.experimental.pallas import tpu as pltpu

LANE = 128


def _round_up(x, m):
    return (x + m - 1) // m * m


def _pad_last(a, n):
    """Zero-pad the last dim of `a` up to n (exact: padded entries are 0)."""
    pad = [(0, 0)] * (a.ndim - 1) + [(0, n - a.shape[-1])]
    return jnp.pad(a, pad)


def _pad_rows(a, n):
    pad = [(0, n - a.shape[0])] + [(0, 0)] * (a.ndim - 1)
    return jnp.pad(a, pad)


def _pick_tile(m, target=512):
    """Largest divisor of m that is <= target and a multiple of 8 (fallback: m)."""
    if m % 8 != 0:
        return m
    tm = min(target, m)
    while m % tm:
        tm -= 8
    return tm


# ----------------------------------------------------------------------------
# Pallas kernel 1: M-tiled matmul + bias (+ optional ReLU) — im2col convolutions
# ----------------------------------------------------------------------------
def _matmul_bias_kernel(a_ref, w_ref, b_ref, o_ref, *, relu):
    acc = jnp.dot(a_ref[...], w_ref[...], preferred_element_type=jnp.float32)
    acc = acc + b_ref[...]
    if relu:
        acc = jnp.maximum(acc, 0.0)
    o_ref[...] = acc.astype(o_ref.dtype)


def matmul_bias(a, w, b, relu=False, out_dtype=jnp.float32, tm=512):
    """a:[M,K] @ w:[K,N] + b, N must be a multiple of 128 (lane-dense stores)."""
    M, K = a.shape
    K2, N = w.shape
    assert K == K2 and N % LANE == 0
    tm = _pick_tile(M, tm)
    grid = (M // tm,)
    return pl.pallas_call(
        functools.partial(_matmul_bias_kernel, relu=relu),
        out_shape=jax.ShapeDtypeStruct((M, N), out_dtype),
        grid_spec=pltpu.PrefetchScalarGridSpec(
            num_scalar_prefetch=0,
            grid=grid,
            in_specs=[
                pl.BlockSpec((tm, K), lambda i: (i, 0)),   # activations, tiled on M
                pl.BlockSpec((K, N), lambda i: (0, 0)),    # weights, block-constant
                pl.BlockSpec((1, N), lambda i: (0, 0)),    # bias, block-constant
            ],
            out_specs=pl.BlockSpec((tm, N), lambda i: (i, 0)),
        ),
        compiler_params=pltpu.CompilerParams(
            dimension_semantics=("parallel",)),
    )(a.astype(jnp.bfloat16), w.astype(jnp.bfloat16),
      b.astype(jnp.float32).reshape(1, N))


def conv3x3(x_nhwc, w, b, relu=True, out_dtype=jnp.float32):
    """3x3 conv, stride 1, pad 1, via im2col + gridded Pallas matmul.
    TODO(synk): im2col is materialized by XLA; a halo-BlockSpec fused conv kernel
    would cut HBM traffic further but is unnecessary at these channel counts."""
    B, H, W, C = x_nhwc.shape
    xp = jnp.pad(x_nhwc, ((0, 0), (1, 1), (1, 1), (0, 0)))
    cols = jnp.concatenate(
        [xp[:, i:i + H, j:j + W, :] for i in range(3) for j in range(3)], axis=-1
    )  # [B, H, W, 9*C]
    out = matmul_bias(cols.reshape(B * H * W, 9 * C), w, b,
                      relu=relu, out_dtype=out_dtype)
    return out.reshape(B, H, W, -1)


# ----------------------------------------------------------------------------
# Pallas kernel 2: attention decoder (AttentionCell + LSTMCell + generator)
# grid = (num_steps,) "arbitrary"; h/c and i2h-projection live in VMEM scratch.
# ----------------------------------------------------------------------------
def _attn_decoder_kernel(oh_ref, bH_ref, i2h_ref, h2h_w_ref, h2h_b_ref,
                         score_ref, wih_ctx_ref, whh_ref, b_ref,
                         gen_w_ref, gen_b_ref, out_ref,
                         h_sc, c_sc, bHp_sc, *, hidden):
    step = pl.program_id(0)
    bf = jnp.bfloat16
    bH = bH_ref[...]                                     # [B, T, Dp] bf16 (resident)

    @pl.when(step == 0)
    def _init():
        h_sc[...] = jnp.zeros_like(h_sc)
        c_sc[...] = jnp.zeros_like(c_sc)
        # loop-invariant i2h(batch_H) projection: computed once, kept in VMEM (f32)
        bHp_sc[...] = jnp.einsum('btd,dh->bth', bH, i2h_ref[...],
                                 preferred_element_type=jnp.float32)

    h = h_sc[...]                                        # [B, H] f32
    c = c_sc[...]
    h_b = h.astype(bf)

    h_proj = (jnp.dot(h_b, h2h_w_ref[...], preferred_element_type=jnp.float32)
              + h2h_b_ref[...])                          # [B, H] f32
    e = jnp.tanh(bHp_sc[...] + h_proj[:, None, :])       # [B, T, H] f32 (EUP tanh)
    score_vec = score_ref[0]                             # [H] f32
    scores = jnp.sum(e * score_vec[None, None, :], axis=-1)     # [B, T]
    alpha = jax.nn.softmax(scores, axis=-1)                     # [B, T] f32
    # context on the MXU: batched (1,T) @ (T,Dp)
    context = jnp.einsum('bqt,btd->bqd', alpha[:, None, :].astype(bf), bH,
                         preferred_element_type=jnp.float32)[:, 0, :]   # [B, Dp]

    # LSTMCell gates; w_ih @ one_hot replaced by a pre-gathered row (oh_ref).
    gates = (jnp.dot(context.astype(bf), wih_ctx_ref[...],
                     preferred_element_type=jnp.float32)
             + oh_ref[0]
             + jnp.dot(h_b, whh_ref[...], preferred_element_type=jnp.float32)
             + b_ref[...])                               # [B, 4H]  (4H = 128 -> lane-dense)
    i_g = jax.nn.sigmoid(gates[:, 0 * hidden:1 * hidden])
    f_g = jax.nn.sigmoid(gates[:, 1 * hidden:2 * hidden])
    g_g = jnp.tanh(gates[:, 2 * hidden:3 * hidden])
    o_g = jax.nn.sigmoid(gates[:, 3 * hidden:4 * hidden])
    c_new = f_g * c + i_g * g_g
    h_new = o_g * jnp.tanh(c_new)
    h_sc[...] = h_new
    c_sc[...] = c_new

    # generator: lane-dense (class dim zero-padded to 128)
    out_ref[0] = (jnp.dot(h_new.astype(bf), gen_w_ref[...],
                          preferred_element_type=jnp.float32) + gen_b_ref[...])


def attention_decode(batch_H, onehot_proj, p, hidden, num_class):
    """batch_H: [B, T, Dp] (Dp = 128-padded channels, pads are exactly 0)
       onehot_proj: [num_steps, B, 4H] = wih_oh rows gathered by the target ids."""
    B, T, Dp = batch_H.shape
    num_steps = onehot_proj.shape[0]
    Cp = _round_up(num_class, LANE)
    bf = jnp.bfloat16

    batch_H = batch_H.astype(bf)                         # resident bf16, cast once
    i2h = _pad_rows(p['i2h_w'], Dp).astype(bf)           # [Dp, H]  (zero rows for pads)
    wih_ctx = _pad_rows(p['wih_ctx'], Dp).astype(bf)     # [Dp, 4H]
    gen_w = _pad_last(p['gen_w'], Cp).astype(bf)         # [H, Cp]
    gen_b = _pad_last(p['gen_b'], Cp).reshape(1, Cp)
    score_row = p['score_w'].reshape(1, hidden)          # [1, H] (score has no bias)

    const2 = lambda s: (0, 0)
    const3 = lambda s: (0, 0, 0)

    probs = pl.pallas_call(
        functools.partial(_attn_decoder_kernel, hidden=hidden),
        out_shape=jax.ShapeDtypeStruct((num_steps, B, Cp), jnp.float32),
        grid_spec=pltpu.PrefetchScalarGridSpec(
            num_scalar_prefetch=0,
            grid=(num_steps,),
            in_specs=[
                pl.BlockSpec((1, B, 4 * hidden), lambda s: (s, 0, 0)),  # per-step gather
                pl.BlockSpec((B, T, Dp), const3),                       # batch_H (resident)
                pl.BlockSpec((Dp, hidden), const2),                     # i2h_w
                pl.BlockSpec((hidden, hidden), const2),                 # h2h_w
                pl.BlockSpec((1, hidden), const2),                      # h2h_b
                pl.BlockSpec((1, hidden), const2),                      # score_w (row)
                pl.BlockSpec((Dp, 4 * hidden), const2),                 # wih_ctx
                pl.BlockSpec((hidden, 4 * hidden), const2),             # whh
                pl.BlockSpec((1, 4 * hidden), const2),                  # b_lstm
                pl.BlockSpec((hidden, Cp), const2),                     # gen_w
                pl.BlockSpec((1, Cp), const2),                          # gen_b
            ],
            out_specs=pl.BlockSpec((1, B, Cp), lambda s: (s, 0, 0)),
            scratch_shapes=[pltpu.VMEM((B, hidden), jnp.float32),       # h
                            pltpu.VMEM((B, hidden), jnp.float32),       # c
                            pltpu.VMEM((B, T, hidden), jnp.float32)],   # i2h(batch_H)
        ),
        compiler_params=pltpu.CompilerParams(
            dimension_semantics=("arbitrary",)),          # steps are sequentially dependent
    )(onehot_proj, batch_H, i2h,
      p['h2h_w'].astype(bf), p['h2h_b'].reshape(1, hidden),
      score_row, wih_ctx, p['whh'].astype(bf),
      p['b_lstm'].reshape(1, 4 * hidden), gen_w, gen_b)

    # [num_steps, B, Cp] -> [B, num_steps, num_class] (tiny final slice/transpose)
    return jnp.transpose(probs, (1, 0, 2))[:, :, :num_class]


# ----------------------------------------------------------------------------
# Feature extraction (VGG-style) + model forward
# ----------------------------------------------------------------------------
def feature_extraction(image_nchw, p):
    # TODO(synk): VGG_FeatureExtractor class is not provided; a small deterministic
    # VGG-style conv stack + height-mean (pool-to-height-1) keeps the output contract.
    B, C_in, H, W = image_nchw.shape
    c_mid = p['b1'].shape[0]
    c_out = p['b2'].shape[0]

    x = jnp.transpose(image_nchw, (0, 2, 3, 1)).astype(jnp.bfloat16)   # NHWC, bf16 path

    # conv1: output channels zero-padded to 128 lanes (exact — pads stay 0 through relu)
    w1p = _pad_last(p['w1'], LANE)
    b1p = _pad_last(p['b1'], LANE)
    x = conv3x3(x, w1p, b1p, relu=True, out_dtype=jnp.bfloat16)        # [B,H,W,128]

    # 2x2 maxpool (exact in bf16)
    x = x.reshape(B, H // 2, 2, W // 2, 2, LANE).max(axis=(2, 4))      # [B,H/2,W/2,128]

    # conv2: drop the zero channel pads before im2col (8x smaller contraction, exact),
    # pad output channels to 128 lanes.
    x = x[:, :, :, :c_mid]                                             # [B,H/2,W/2,c_mid]
    w2p = _pad_last(p['w2'], LANE)                                     # [9*c_mid, 128]
    b2p = _pad_last(p['b2'], LANE)
    x = conv3x3(x, w2p, b2p, relu=True, out_dtype=jnp.float32)         # [B,H/2,W/2,128]

    # collapse height -> sequence (equivalent of squeeze().permute(0,2,1)): [B, T, 128]
    visual_feature = jnp.mean(x, axis=1)
    return visual_feature


def model_forward(image, masks, text, p, *, hidden, num_class):
    # Transformation == 'None' -> identity (masks unused for Ours_pred)
    visual_feature = feature_extraction(image, p)
    # SequenceModeling == 'None' -> contextual_feature = visual_feature
    contextual_feature = visual_feature
    # Prediction == 'Attn', teacher forcing (is_train=True):
    # one_hot(text) @ wih_oh == wih_oh[text]  -> exact row gather, no dense one-hot.
    onehot_proj = jnp.take(p['wih_oh'], text.T, axis=0)   # [num_steps, B, 4H]
    ours_pred = attention_decode(contextual_feature, onehot_proj, p, hidden, num_class)
    return ours_pred  # Model.forward returns only Ours_pred


# ----------------------------------------------------------------------------
if __name__ == "__main__":
    key = jax.random.PRNGKey(0)
    B, C_in, H, W = 2, 1, 16, 32
    C_mid, C_out = 16, 32          # opt.output_channel = 32
    hidden = 32                    # opt.hidden_size
    num_class = 12                 # opt.num_class
    batch_max_length = 8           # opt.batch_max_length
    num_steps = batch_max_length + 1

    keys = jax.random.split(key, 18)

    def rnd(k, shape, scale=0.1):
        return scale * jax.random.normal(k, shape, jnp.float32)

    params = dict(
        w1=rnd(keys[0], (9 * C_in, C_mid)),  b1=rnd(keys[1], (C_mid,)),
        w2=rnd(keys[2], (9 * C_mid, C_out)), b2=rnd(keys[3], (C_out,)),
        i2h_w=rnd(keys[4], (C_out, hidden)),
        h2h_w=rnd(keys[5], (hidden, hidden)), h2h_b=rnd(keys[6], (hidden,)),
        score_w=rnd(keys[7], (hidden, 1)),
        wih_ctx=rnd(keys[8], (C_out, 4 * hidden)),
        wih_oh=rnd(keys[9], (num_class, 4 * hidden)),
        whh=rnd(keys[10], (hidden, 4 * hidden)),
        b_lstm=rnd(keys[11], (4 * hidden,)),
        gen_w=rnd(keys[12], (hidden, num_class)), gen_b=rnd(keys[13], (num_class,)),
    )

    image = jax.random.normal(keys[14], (B, C_in, H, W), jnp.float32)
    masks = jnp.ones((B, 1, H, W), jnp.float32)   # unused (Transformation='None')
    # [GO]-prefixed targets of length batch_max_length+1 (matches Attention.forward)
    text = jax.random.randint(keys[15], (B, num_steps), 1, num_class)
    text = text.at[:, 0].set(0)
    assert text.shape[1] == batch_max_length + 1

    fwd = jax.jit(functools.partial(model_forward, hidden=hidden, num_class=num_class))
    ours_pred = fwd(image, masks, text, params)
    ours_pred = jax.block_until_ready(ours_pred)
    assert ours_pred.shape == (B, num_steps, num_class)
    print("KERNEL_OK")
</pallas_src>

<mosaic_0001>
module attributes {stable_mosaic.version = 11 : i64} {
  func.func @_matmul_bias_kernel(%arg0: i32, %arg1: memref<512x9xbf16, #tpu.memory_space<vmem>>, %arg2: memref<9x128xbf16, #tpu.memory_space<vmem>>, %arg3: memref<1x128xf32, #tpu.memory_space<vmem>>, %arg4: memref<512x128xbf16, #tpu.memory_space<vmem>>) attributes {dimension_semantics = [#tpu.dimension_semantics<parallel>], iteration_bounds = array<i64: 2>, scalar_prefetch = 0 : i64, scratch_operands = 0 : i64, tpu.core_type = #tpu.core_type<tc>, window_params = [{transform_indices = @transform_0, window_bounds = array<i64: 512, 9>}, {pipeline_mode = #tpu.pipeline_mode<synchronous>, transform_indices = @transform_1, window_bounds = array<i64: 9, 128>}, {pipeline_mode = #tpu.pipeline_mode<synchronous>, transform_indices = @transform_2, window_bounds = array<i64: 1, 128>}, {transform_indices = @transform_3, window_bounds = array<i64: 512, 128>}]} {
    %c0 = arith.constant 0 : index
    %c0_0 = arith.constant 0 : index
    %0 = vector.load %arg1[%c0, %c0_0] : memref<512x9xbf16, #tpu.memory_space<vmem>>, vector<512x9xbf16>
    %c0_1 = arith.constant 0 : index
    %c0_2 = arith.constant 0 : index
    %1 = vector.load %arg2[%c0_1, %c0_2] : memref<9x128xbf16, #tpu.memory_space<vmem>>, vector<9x128xbf16>
    %cst = arith.constant dense<0.000000e+00> : vector<512x128xf32>
    %2 = tpu.matmul %0, %1, %cst {dimension_numbers = #tpu.dot_dimension_numbers<[1], [0], [0], [1], [0, 0, 1, 1], [], []>} : vector<512x9xbf16>, vector<9x128xbf16>, vector<512x128xf32> -> vector<512x128xf32>
    %c0_3 = arith.constant 0 : index
    %c0_4 = arith.constant 0 : index
    %3 = vector.load %arg3[%c0_3, %c0_4] : memref<1x128xf32, #tpu.memory_space<vmem>>, vector<1x128xf32>
    %4 = vector.broadcast %3 : vector<1x128xf32> to vector<512x128xf32>
    %5 = arith.addf %2, %4 : vector<512x128xf32>
    %cst_5 = arith.constant 0.000000e+00 : f32
    %6 = vector.broadcast %cst_5 : f32 to vector<512x128xf32>
    %7 = arith.maximumf %5, %6 : vector<512x128xf32>
    %8 = arith.truncf %7 : vector<512x128xf32> to vector<512x128xbf16>
    %c0_6 = arith.constant 0 : index
    %c0_7 = arith.constant 0 : index
    %9 = vector.load %arg4[%c0_6, %c0_7] : memref<512x128xbf16, #tpu.memory_space<vmem>>, vector<512x128xbf16>
    tpu.vector_store %arg4[%c0_6, %c0_7], %8 {strides = array<i32>} : memref<512x128xbf16, #tpu.memory_space<vmem>>, vector<512x128xbf16>,
    return
  }
  func.func @transform_0(%arg0: i32) -> (i32, i32) {
    %c0_i32 = arith.constant 0 : i32
    %c0_i32_0 = arith.constant 0 : i32
    return %arg0, %c0_i32 : i32, i32
  }
  func.func @transform_1(%arg0: i32) -> (i32, i32) {
    %c0_i32 = arith.constant 0 : i32
    %c0_i32_0 = arith.constant 0 : i32
    %c0_i32_1 = arith.constant 0 : i32
    return %c0_i32, %c0_i32_0 : i32, i32
  }
  func.func @transform_2(%arg0: i32) -> (i32, i32) {
    %c0_i32 = arith.constant 0 : i32
    %c0_i32_0 = arith.constant 0 : i32
    %c0_i32_1 = arith.constant 0 : i32
    return %c0_i32, %c0_i32_0 : i32, i32
  }
  func.func @transform_3(%arg0: i32) -> (i32, i32) {
    %c0_i32 = arith.constant 0 : i32
    %c0_i32_0 = arith.constant 0 : i32
    return %arg0, %c0_i32 : i32, i32
  }
}

module attributes {stable_mosaic.version = 11 : i64} {
  func.func @_matmul_bias_kernel(%arg0: i32, %arg1: memref<256x144xbf16, #tpu.memory_space<vmem>>, %arg2: memref<144x128xbf16, #tpu.memory_space<vmem>>, %arg3: memref<1x128xf32, #tpu.memory_space<vmem>>, %arg4: memref<256x128xf32, #tpu.memory_space<vmem>>) attributes {dimension_semantics = [#tpu.dimension_semantics<parallel>], iteration_bounds = array<i64: 1>, scalar_prefetch = 0 : i64, scratch_operands = 0 : i64, tpu.core_type = #tpu.core_type<tc>, window_params = [{transform_indices = @transform_0, window_bounds = array<i64: 256, 144>}, {pipeline_mode = #tpu.pipeline_mode<synchronous>, transform_indices = @transform_1, window_bounds = array<i64: 144, 128>}, {pipeline_mode = #tpu.pipeline_mode<synchronous>, transform_indices = @transform_2, window_bounds = array<i64: 1, 128>}, {transform_indices = @transform_3, window_bounds = array<i64: 256, 128>}]} {
    %c0 = arith.constant 0 : index
    %c0_0 = arith.constant 0 : index
    %0 = vector.load %arg1[%c0, %c0_0] : memref<256x144xbf16, #tpu.memory_space<vmem>>, vector<256x144xbf16>
    %c0_1 = arith.constant 0 : index
    %c0_2 = arith.constant 0 : index
    %1 = vector.load %arg2[%c0_1, %c0_2] : memref<144x128xbf16, #tpu.memory_space<vmem>>, vector<144x128xbf16>
    %cst = arith.constant dense<0.000000e+00> : vector<256x128xf32>
    %2 = tpu.matmul %0, %1, %cst {dimension_numbers = #tpu.dot_dimension_numbers<[1], [0], [0], [1], [0, 0, 1, 1], [], []>} : vector<256x144xbf16>, vector<144x128xbf16>, vector<256x128xf32> -> vector<256x128xf32>
    %c0_3 = arith.constant 0 : index
    %c0_4 = arith.constant 0 : index
    %3 = vector.load %arg3[%c0_3, %c0_4] : memref<1x128xf32, #tpu.memory_space<vmem>>, vector<1x128xf32>
    %4 = vector.broadcast %3 : vector<1x128xf32> to vector<256x128xf32>
    %5 = arith.addf %2, %4 : vector<256x128xf32>
    %cst_5 = arith.constant 0.000000e+00 : f32
    %6 = vector.broadcast %cst_5 : f32 to vector<256x128xf32>
    %7 = arith.maximumf %5, %6 : vector<256x128xf32>
    %c0_6 = arith.constant 0 : index
    %c0_7 = arith.constant 0 : index
    %8 = vector.load %arg4[%c0_6, %c0_7] : memref<256x128xf32, #tpu.memory_space<vmem>>, vector<256x128xf32>
    tpu.vector_store %arg4[%c0_6, %c0_7], %7 {strides = array<i32>} : memref<256x128xf32, #tpu.memory_space<vmem>>, vector<256x128xf32>,
    return
  }
  func.func @transform_0(%arg0: i32) -> (i32, i32) {
    %c0_i32 = arith.constant 0 : i32
    %c0_i32_0 = arith.constant 0 : i32
    return %arg0, %c0_i32 : i32, i32
  }
  func.func @transform_1(%arg0: i32) -> (i32, i32) {
    %c0_i32 = arith.constant 0 : i32
    %c0_i32_0 = arith.constant 0 : i32
    %c0_i32_1 = arith.constant 0 : i32
    return %c0_i32, %c0_i32_0 : i32, i32
  }
  func.func @transform_2(%arg0: i32) -> (i32, i32) {
    %c0_i32 = arith.constant 0 : i32
    %c0_i32_0 = arith.constant 0 : i32
    %c0_i32_1 = arith.constant 0 : i32
    return %c0_i32, %c0_i32_0 : i32, i32
  }
  func.func @transform_3(%arg0: i32) -> (i32, i32) {
    %c0_i32 = arith.constant 0 : i32
    %c0_i32_0 = arith.constant 0 : i32
    return %arg0, %c0_i32 : i32, i32
  }
}

module attributes {stable_mosaic.version = 11 : i64} {
  func.func @_attn_decoder_kernel(%arg0: i32, %arg1: memref<1x2x128xf32, #tpu.memory_space<vmem>>, %arg2: memref<2x16x128xbf16, #tpu.memory_space<vmem>>, %arg3: memref<128x32xbf16, #tpu.memory_space<vmem>>, %arg4: memref<32x32xbf16, #tpu.memory_space<vmem>>, %arg5: memref<1x32xf32, #tpu.memory_space<vmem>>, %arg6: memref<1x32xf32, #tpu.memory_space<vmem>>, %arg7: memref<128x128xbf16, #tpu.memory_space<vmem>>, %arg8: memref<32x128xbf16, #tpu.memory_space<vmem>>, %arg9: memref<1x128xf32, #tpu.memory_space<vmem>>, %arg10: memref<32x128xbf16, #tpu.memory_space<vmem>>, %arg11: memref<1x128xf32, #tpu.memory_space<vmem>>, %arg12: memref<1x2x128xf32, #tpu.memory_space<vmem>>, %arg13: memref<2x32xf32, #tpu.memory_space<vmem>>, %arg14: memref<2x32xf32, #tpu.memory_space<vmem>>, %arg15: memref<2x16x32xf32, #tpu.memory_space<vmem>>) attributes {dimension_semantics = [#tpu.dimension_semantics<arbitrary>], iteration_bounds = array<i64: 9>, scalar_prefetch = 0 : i64, scratch_operands = 3 : i64, tpu.core_type = #tpu.core_type<tc>, window_params = [{transform_indices = @transform_0, window_bounds = array<i64: 1, 2, 128>}, {pipeline_mode = #tpu.pipeline_mode<synchronous>, transform_indices = @transform_1, window_bounds = array<i64: 2, 16, 128>}, {pipeline_mode = #tpu.pipeline_mode<synchronous>, transform_indices = @transform_2, window_bounds = array<i64: 128, 32>}, {pipeline_mode = #tpu.pipeline_mode<synchronous>, transform_indices = @transform_3, window_bounds = array<i64: 32, 32>}, {pipeline_mode = #tpu.pipeline_mode<synchronous>, transform_indices = @transform_4, window_bounds = array<i64: 1, 32>}, {pipeline_mode = #tpu.pipeline_mode<synchronous>, transform_indices = @transform_5, window_bounds = array<i64: 1, 32>}, {pipeline_mode = #tpu.pipeline_mode<synchronous>, transform_indices = @transform_6, window_bounds = array<i64: 128, 128>}, {pipeline_mode = #tpu.pipeline_mode<synchronous>, transform_indices = @transform_7, window_bounds = array<i64: 32, 128>}, {pipeline_mode = #tpu.pipeline_mode<synchronous>, transform_indices = @transform_8, window_bounds = array<i64: 1, 128>}, {pipeline_mode = #tpu.pipeline_mode<synchronous>, transform_indices = @transform_9, window_bounds = array<i64: 32, 128>}, {pipeline_mode = #tpu.pipeline_mode<synchronous>, transform_indices = @transform_10, window_bounds = array<i64: 1, 128>}, {transform_indices = @transform_11, window_bounds = array<i64: 1, 2, 128>}]} {
    %c0 = arith.constant 0 : index
    %c0_0 = arith.constant 0 : index
    %c0_1 = arith.constant 0 : index
    %0 = vector.load %arg2[%c0, %c0_0, %c0_1] : memref<2x16x128xbf16, #tpu.memory_space<vmem>>, vector<2x16x128xbf16>
    %c0_i32 = arith.constant 0 : i32
    %1 = arith.cmpi eq, %arg0, %c0_i32 : i32
    %2 = arith.extui %1 : i1 to i32
    %c0_i32_2 = arith.constant 0 : i32
    %3 = arith.cmpi ne, %2, %c0_i32_2 : i32
    scf.if %3 {
      %cst_47 = arith.constant 0.000000e+00 : f32
      %86 = vector.broadcast %cst_47 : f32 to vector<2x32xf32>
      %c0_48 = arith.constant 0 : index
      %c0_49 = arith.constant 0 : index
      %87 = vector.load %arg13[%c0_48, %c0_49] : memref<2x32xf32, #tpu.memory_space<vmem>>, vector<2x32xf32>
      tpu.vector_store %arg13[%c0_48, %c0_49], %86 {strides = array<i32>} : memref<2x32xf32, #tpu.memory_space<vmem>>, vector<2x32xf32>,
      %cst_50 = arith.constant 0.000000e+00 : f32
      %88 = vector.broadcast %cst_50 : f32 to vector<2x32xf32>
      %c0_51 = arith.constant 0 : index
      %c0_52 = arith.constant 0 : index
      %89 = vector.load %arg14[%c0_51, %c0_52] : memref<2x32xf32, #tpu.memory_space<vmem>>, vector<2x32xf32>
      tpu.vector_store %arg14[%c0_51, %c0_52], %88 {strides = array<i32>} : memref<2x32xf32, #tpu.memory_space<vmem>>, vector<2x32xf32>,
      %c0_53 = arith.constant 0 : index
      %c0_54 = arith.constant 0 : index
      %90 = vector.load %arg3[%c0_53, %c0_54] : memref<128x32xbf16, #tpu.memory_space<vmem>>, vector<128x32xbf16>
      "tpu.trace_start"() <{level = 10 : i32, message = "btd,dh->bth"}> : () -> ()
      %cst_55 = arith.constant dense<0.000000e+00> : vector<2x16x32xf32>
      %91 = tpu.matmul %0, %90, %cst_55 {dimension_numbers = #tpu.dot_dimension_numbers<[2], [0], [0, 1], [1], [0, 0, 0, 1, 1, 1], [], []>} : vector<2x16x128xbf16>, vector<128x32xbf16>, vector<2x16x32xf32> -> vector<2x16x32xf32>
      "tpu.trace_stop"() : () -> ()
      %c0_56 = arith.constant 0 : index
      %c0_57 = arith.constant 0 : index
      %c0_58 = arith.constant 0 : index
      %92 = vector.load %arg15[%c0_56, %c0_57, %c0_58] : memref<2x16x32xf32, #tpu.memory_space<vmem>>, vector<2x16x32xf32>
      tpu.vector_store %arg15[%c0_56, %c0_57, %c0_58], %91 {strides = array<i32>} : memref<2x16x32xf32, #tpu.memory_space<vmem>>, vector<2x16x32xf32>,
    } else {
    }
    %c0_3 = arith.constant 0 : index
    %c0_4 = arith.constant 0 : index
    %4 = vector.load %arg13[%c0_3, %c0_4] : memref<2x32xf32, #tpu.memory_space<vmem>>, vector<2x32xf32>
    %c0_5 = arith.constant 0 : index
    %c0_6 = arith.constant 0 : index
    %5 = vector.load %arg14[%c0_5, %c0_6] : memref<2x32xf32, #tpu.memory_space<vmem>>, vector<2x32xf32>
    %6 = arith.truncf %4 : vector<2x32xf32> to vector<2x32xbf16>
    %c0_7 = arith.constant 0 : index
    %c0_8 = arith.constant 0 : index
    %7 = vector.load %arg4[%c0_7, %c0_8] : memref<32x32xbf16, #tpu.memory_space<vmem>>, vector<32x32xbf16>
    %cst = arith.constant dense<0.000000e+00> : vector<2x32xf32>
    %8 = tpu.matmul %6, %7, %cst {dimension_numbers = #tpu.dot_dimension_numbers<[1], [0], [0], [1], [0, 0, 1, 1], [], []>} : vector<2x32xbf16>, vector<32x32xbf16>, vector<2x32xf32> -> vector<2x32xf32>
    %c0_9 = arith.constant 0 : index
    %c0_10 = arith.constant 0 : index
    %9 = vector.load %arg5[%c0_9, %c0_10] : memref<1x32xf32, #tpu.memory_space<vmem>>, vector<1x32xf32>
    %10 = vector.broadcast %9 : vector<1x32xf32> to vector<2x32xf32>
    %11 = arith.addf %8, %10 : vector<2x32xf32>
    %c0_11 = arith.constant 0 : index
    %c0_12 = arith.constant 0 : index
    %c0_13 = arith.constant 0 : index
    %12 = vector.load %arg15[%c0_11, %c0_12, %c0_13] : memref<2x16x32xf32, #tpu.memory_space<vmem>>, vector<2x16x32xf32>
    %13 = vector.shape_cast %11 : vector<2x32xf32> to vector<2x1x32xf32>
    %14 = vector.broadcast %13 : vector<2x1x32xf32> to vector<2x16x32xf32>
    %15 = arith.addf %12, %14 : vector<2x16x32xf32>
    %16 = math.tanh %15 : vector<2x16x32xf32>
    %c0_14 = arith.constant 0 : index
    %c0_15 = arith.constant 0 : index
    %17 = vector.load %arg6[%c0_14, %c0_15] : memref<1x32xf32, #tpu.memory_space<vmem>>, vector<1x32xf32>
    %18 = vector.shape_cast %17 : vector<1x32xf32> to vector<32xf32>
    %19 = vector.shape_cast %18 : vector<32xf32> to vector<1x1x32xf32>
    %20 = vector.broadcast %19 : vector<1x1x32xf32> to vector<2x16x32xf32>
    %21 = arith.mulf %16, %20 : vector<2x16x32xf32>
    %cst_16 = arith.constant dense<0.000000e+00> : vector<2x16xf32>
    %22 = vector.multi_reduction <add>, %21, %cst_16 [2] : vector<2x16x32xf32> to vector<2x16xf32>
    %cst_17 = arith.constant dense<0xFF800000> : vector<2xf32>
    %23 = vector.multi_reduction <maximumf>, %22, %cst_17 [1] : vector<2x16xf32> to vector<2xf32>
    %cst_18 = arith.constant 0xFF800000 : f32
    %24 = vector.broadcast %cst_18 : f32 to vector<2xf32>
    %25 = arith.maximumf %24, %23 : vector<2xf32>
    %26 = vector.shape_cast %25 : vector<2xf32> to vector<2x1xf32>
    %27 = vector.broadcast %26 : vector<2x1xf32> to vector<2x16xf32>
    %28 = arith.subf %22, %27 : vector<2x16xf32>
    %29 = math.exp %28 : vector<2x16xf32>
    %cst_19 = arith.constant dense<0.000000e+00> : vector<2xf32>
    %30 = vector.multi_reduction <add>, %29, %cst_19 [1] : vector<2x16xf32> to vector<2xf32>
    %31 = vector.shape_cast %30 : vector<2xf32> to vector<2x1xf32>
    %32 = vector.broadcast %31 : vector<2x1xf32> to vector<2x16xf32>
    %33 = arith.divf %29, %32 : vector<2x16xf32>
    %34 = vector.shape_cast %33 : vector<2x16xf32> to vector<2x1x16xf32>
    %35 = arith.truncf %34 : vector<2x1x16xf32> to vector<2x1x16xbf16>
    "tpu.trace_start"() <{level = 10 : i32, message = "bqt,btd->bqd"}> : () -> ()
    %cst_20 = arith.constant dense<0.000000e+00> : vector<2x1x128xf32>
    %36 = tpu.matmul %35, %0, %cst_20 {dimension_numbers = #tpu.dot_dimension_numbers<[2], [1], [1], [2], [0, 0, 0, 1, 1, 2], [0], [0]>} : vector<2x1x16xbf16>, vector<2x16x128xbf16>, vector<2x1x128xf32> -> vector<2x1x128xf32>
    "tpu.trace_stop"() : () -> ()
    %37 = vector.shape_cast %36 : vector<2x1x128xf32> to vector<2x128xf32>
    %38 = arith.truncf %37 : vector<2x128xf32> to vector<2x128xbf16>
    %c0_21 = arith.constant 0 : index
    %c0_22 = arith.constant 0 : index
    %39 = vector.load %arg7[%c0_21, %c0_22] : memref<128x128xbf16, #tpu.memory_space<vmem>>, vector<128x128xbf16>
    %cst_23 = arith.constant dense<0.000000e+00> : vector<2x128xf32>
    %40 = tpu.matmul %38, %39, %cst_23 {dimension_numbers = #tpu.dot_dimension_numbers<[1], [0], [0], [1], [0, 0, 1, 1], [], []>} : vector<2x128xbf16>, vector<128x128xbf16>, vector<2x128xf32> -> vector<2x128xf32>
    %c0_24 = arith.constant 0 : index
    %c0_25 = arith.constant 0 : index
    %c0_26 = arith.constant 0 : index
    %41 = vector.load %arg1[%c0_24, %c0_25, %c0_26] : memref<1x2x128xf32, #tpu.memory_space<vmem>>, vector<1x2x128xf32>
    %42 = vector.shape_cast %41 : vector<1x2x128xf32> to vector<2x128xf32>
    %43 = arith.addf %40, %42 : vector<2x128xf32>
    %c0_27 = arith.constant 0 : index
    %c0_28 = arith.constant 0 : index
    %44 = vector.load %arg8[%c0_27, %c0_28] : memref<32x128xbf16, #tpu.memory_space<vmem>>, vector<32x128xbf16>
    %cst_29 = arith.constant dense<0.000000e+00> : vector<2x128xf32>
    %45 = tpu.matmul %6, %44, %cst_29 {dimension_numbers = #tpu.dot_dimension_numbers<[1], [0], [0], [1], [0, 0, 1, 1], [], []>} : vector<2x32xbf16>, vector<32x128xbf16>, vector<2x128xf32> -> vector<2x128xf32>
    %46 = arith.addf %43, %45 : vector<2x128xf32>
    %c0_30 = arith.constant 0 : index
    %c0_31 = arith.constant 0 : index
    %47 = vector.load %arg9[%c0_30, %c0_31] : memref<1x128xf32, #tpu.memory_space<vmem>>, vector<1x128xf32>
    %48 = vector.broadcast %47 : vector<1x128xf32> to vector<2x128xf32>
    %49 = arith.addf %46, %48 : vector<2x128xf32>
    %50 = vector.extract_strided_slice %49 {offsets = [0, 0], sizes = [2, 32], strides = [1, 1]} : vector<2x128xf32> to vector<2x32xf32>
    %51 = arith.negf %50 : vector<2x32xf32>
    %52 = math.exp %51 : vector<2x32xf32>
    %cst_32 = arith.constant 1.000000e+00 : f32
    %53 = vector.broadcast %cst_32 : f32 to vector<2x32xf32>
    %54 = arith.addf %53, %52 : vector<2x32xf32>
    %55 = arith.divf %53, %54 : vector<2x32xf32>
    %56 = vector.extract_strided_slice %49 {offsets = [0, 32], sizes = [2, 32], strides = [1, 1]} : vector<2x128xf32> to vector<2x32xf32>
    %57 = arith.negf %56 : vector<2x32xf32>
    %58 = math.exp %57 : vector<2x32xf32>
    %cst_33 = arith.constant 1.000000e+00 : f32
    %59 = vector.broadcast %cst_33 : f32 to vector<2x32xf32>
    %60 = arith.addf %59, %58 : vector<2x32xf32>
    %61 = arith.divf %59, %60 : vector<2x32xf32>
    %62 = vector.extract_strided_slice %49 {offsets = [0, 64], sizes = [2, 32], strides = [1, 1]} : vector<2x128xf32> to vector<2x32xf32>
    %63 = math.tanh %62 : vector<2x32xf32>
    %64 = vector.extract_strided_slice %49 {offsets = [0, 96], sizes = [2, 32], strides = [1, 1]} : vector<2x128xf32> to vector<2x32xf32>
    %65 = arith.negf %64 : vector<2x32xf32>
    %66 = math.exp %65 : vector<2x32xf32>
    %cst_34 = arith.constant 1.000000e+00 : f32
    %67 = vector.broadcast %cst_34 : f32 to vector<2x32xf32>
    %68 = arith.addf %67, %66 : vector<2x32xf32>
    %69 = arith.divf %67, %68 : vector<2x32xf32>
    %70 = arith.mulf %61, %5 : vector<2x32xf32>
    %71 = arith.mulf %55, %63 : vector<2x32xf32>
    %72 = arith.addf %70, %71 : vector<2x32xf32>
    %73 = math.tanh %72 : vector<2x32xf32>
    %74 = arith.mulf %69, %73 : vector<2x32xf32>
    %c0_35 = arith.constant 0 : index
    %c0_36 = arith.constant 0 : index
    %75 = vector.load %arg13[%c0_35, %c0_36] : memref<2x32xf32, #tpu.memory_space<vmem>>, vector<2x32xf32>
    tpu.vector_store %arg13[%c0_35, %c0_36], %74 {strides = array<i32>} : memref<2x32xf32, #tpu.memory_space<vmem>>, vector<2x32xf32>,
    %c0_37 = arith.constant 0 : index
    %c0_38 = arith.constant 0 : index
    %76 = vector.load %arg14[%c0_37, %c0_38] : memref<2x32xf32, #tpu.memory_space<vmem>>, vector<2x32xf32>
    tpu.vector_store %arg14[%c0_37, %c0_38], %72 {strides = array<i32>} : memref<2x32xf32, #tpu.memory_space<vmem>>, vector<2x32xf32>,
    %77 = arith.truncf %74 : vector<2x32xf32> to vector<2x32xbf16>
    %c0_39 = arith.constant 0 : index
    %c0_40 = arith.constant 0 : index
    %78 = vector.load %arg10[%c0_39, %c0_40] : memref<32x128xbf16, #tpu.memory_space<vmem>>, vector<32x128xbf16>
    %cst_41 = arith.constant dense<0.000000e+00> : vector<2x128xf32>
    %79 = tpu.matmul %77, %78, %cst_41 {dimension_numbers = #tpu.dot_dimension_numbers<[1], [0], [0], [1], [0, 0, 1, 1], [], []>} : vector<2x32xbf16>, vector<32x128xbf16>, vector<2x128xf32> -> vector<2x128xf32>
    %c0_42 = arith.constant 0 : index
    %c0_43 = arith.constant 0 : index
    %80 = vector.load %arg11[%c0_42, %c0_43] : memref<1x128xf32, #tpu.memory_space<vmem>>, vector<1x128xf32>
    %81 = vector.broadcast %80 : vector<1x128xf32> to vector<2x128xf32>
    %82 = arith.addf %79, %81 : vector<2x128xf32>
    %c0_44 = arith.constant 0 : index
    %c0_45 = arith.constant 0 : index
    %c0_46 = arith.constant 0 : index
    %83 = vector.load %arg12[%c0_44, %c0_45, %c0_46] : memref<1x2x128xf32, #tpu.memory_space<vmem>>, vector<1x2x128xf32>
    %84 = vector.shape_cast %83 : vector<1x2x128xf32> to vector<2x128xf32>
    %85 = vector.shape_cast %82 : vector<2x128xf32> to vector<1x2x128xf32>
    tpu.vector_store %arg12[%c0_44, %c0_45, %c0_46], %85 {strides = array<i32>} : memref<1x2x128xf32, #tpu.memory_space<vmem>>, vector<1x2x128xf32>,
    return
  }
  func.func @transform_0(%arg0: i32) -> (i32, i32, i32) {
    %c0_i32 = arith.constant 0 : i32
    %c0_i32_0 = arith.constant 0 : i32
    %c0_i32_1 = arith.constant 0 : i32
    return %arg0, %c0_i32, %c0_i32_0 : i32, i32, i32
  }
  func.func @transform_1(%arg0: i32) -> (i32, i32, i32) {
    %c0_i32 = arith.constant 0 : i32
    %c0_i32_0 = arith.constant 0 : i32
    %c0_i32_1 = arith.constant 0 : i32
    %c0_i32_2 = arith.constant 0 : i32
    return %c0_i32, %c0_i32_0, %c0_i32_1 : i32, i32, i32
  }
  func.func @transform_2(%arg0: i32) -> (i32, i32) {
    %c0_i32 = arith.constant 0 : i32
    %c0_i32_0 = arith.constant 0 : i32
    %c0_i32_1 = arith.constant 0 : i32
    return %c0_i32, %c0_i32_0 : i32, i32
  }
  func.func @transform_3(%arg0: i32) -> (i32, i32) {
    %c0_i32 = arith.constant 0 : i32
    %c0_i32_0 = arith.constant 0 : i32
    %c0_i32_1 = arith.constant 0 : i32
    return %c0_i32, %c0_i32_0 : i32, i32
  }
  func.func @transform_4(%arg0: i32) -> (i32, i32) {
    %c0_i32 = arith.constant 0 : i32
    %c0_i32_0 = arith.constant 0 : i32
    %c0_i32_1 = arith.constant 0 : i32
    return %c0_i32, %c0_i32_0 : i32, i32
  }
  func.func @transform_5(%arg0: i32) -> (i32, i32) {
    %c0_i32 = arith.constant 0 : i32
    %c0_i32_0 = arith.constant 0 : i32
    %c0_i32_1 = arith.constant 0 : i32
    return %c0_i32, %c0_i32_0 : i32, i32
  }
  func.func @transform_6(%arg0: i32) -> (i32, i32) {
    %c0_i32 = arith.constant 0 : i32
    %c0_i32_0 = arith.constant 0 : i32
    %c0_i32_1 = arith.constant 0 : i32
    return %c0_i32, %c0_i32_0 : i32, i32
  }
  func.func @transform_7(%arg0: i32) -> (i32, i32) {
    %c0_i32 = arith.constant 0 : i32
    %c0_i32_0 = arith.constant 0 : i32
    %c0_i32_1 = arith.constant 0 : i32
    return %c0_i32, %c0_i32_0 : i32, i32
  }
  func.func @transform_8(%arg0: i32) -> (i32, i32) {
    %c0_i32 = arith.constant 0 : i32
    %c0_i32_0 = arith.constant 0 : i32
    %c0_i32_1 = arith.constant 0 : i32
    return %c0_i32, %c0_i32_0 : i32, i32
  }
  func.func @transform_9(%arg0: i32) -> (i32, i32) {
    %c0_i32 = arith.constant 0 : i32
    %c0_i32_0 = arith.constant 0 : i32
    %c0_i32_1 = arith.constant 0 : i32
    return %c0_i32, %c0_i32_0 : i32, i32
  }
  func.func @transform_10(%arg0: i32) -> (i32, i32) {
    %c0_i32 = arith.constant 0 : i32
    %c0_i32_0 = arith.constant 0 : i32
    %c0_i32_1 = arith.constant 0 : i32
    return %c0_i32, %c0_i32_0 : i32, i32
  }
  func.func @transform_11(%arg0: i32) -> (i32, i32, i32) {
    %c0_i32 = arith.constant 0 : i32
    %c0_i32_0 = arith.constant 0 : i32
    %c0_i32_1 = arith.constant 0 : i32
    return %arg0, %c0_i32, %c0_i32_0 : i32, i32, i32
  }
}

</mosaic_0001>

<bundles_post_ra>
// kernel: model_forward.3
= control target key start
LH: loop header
LB: loop body
LE: loop exit
PB: predicated region body
PF: predicated region fallthrough
CT: control target
= control target key end

     0   :  { %s1814_s12 = smov 0   ;;  %s2010_s0 = inlined_call_operand.vmem [shape: bf16[1024,9], index: 0, kind: input, shape index: {}]   ;;  %s2011_s1 = inlined_call_operand.vmem [shape: bf16[9,128], index: 1, kind: input, shape index: {}]   ;;  %s2012_s2 = inlined_call_operand.vmem [shape: f32[1,128], index: 2, kind: input, shape index: {}]   ;;  %s2013_s3 = inlined_call_operand.vmem [shape: bf16[1024,128], index: 3, kind: output, shape index: {}]  }
   0x1 LB: > { %s1246_s13 = sadd.s32 4294967295, %s1791_s12   ;;  %p1250_p0 = scmp.ge.s32.totalorder %s1791_s12, 1  ;;  %s1791_s12 = sphi %s1814_s12, %s13_s12  }
   0x2   : > { %p138_p1 = scmp.lt.s32.totalorder %s1791_s12, 3 }
   0x4   : > { %p139_p2 = pnand %p1250_p0, %p138_p1 }
   0x5   : > { %v1752_v0 = vld [vmem:[%s2011_s1] sm:$0x1f] (!%p139_p2)   ;;  %vm510_vm0 = vcmask (!%p139_p2), 1043456   ;;  %vm511_vm1 = vcmask (!%p139_p2), 1044480   ;;  %s1251_s16 = sshll.u32 (!%p139_p2), %s1246_s13, 6  ;;  %v1793_v1 = vmov (!%p139_p2), 65535  }
   0x6   : > { %142 = sbr.rel (%p139_p2) target bundleno = 297 (0x129), region = 32  ;;  %v512_v2 = vsel (!%p139_p2), %vm510_vm0, 4294967295, %v1793_v1  ;;  %p163_p3 = scmp.lt.s32.totalorder (!%p139_p2), %s1251_s16, 127  ;;  %vm413_vm2 = vcmask (!%p139_p2), 72704   ;;  %v1902_v37 = vld [vmem:[%s2012_s2] ss:$0 sm:$0xff] (!%p139_p2) }
   0x7   : > { %v513_v3 = vsel (!%p139_p2), %vm511_vm1, %v512_v2, 0 }
   0x8   : > { %v515_v4 = vand.u32 (!%p139_p2), %v1752_v0, %v513_v3 }
   0xa   : > { %1675 = vmatprep.subr.bf16.mxu0 (!%p139_p2), %v515_v4  ;;  %1741 = vmatprep.subr.bf16.mxu1 (!%p139_p2), %v515_v4 }
   0xb   : > { %1676 = vmatpush3.bf16.msra.mxu0 (!%p139_p2), %v515_v4  ;;  %1742 = vmatpush3.bf16.msra.mxu1 (!%p139_p2), %v515_v4 }
   0xd   : > { %s2015_s16 = smov (!%p163_p3, %s1251_s16), 127 }
   0xe   : > { %s1252_s17 = sshll.u32 %s2015_s16, 2 }
   0xf   : > { %s1833_s20 = scalar_lea.vmem %s2010_s0, %s1252_s17  ;;  %s1917_s25 = scalar_lea.vmem %s2013_s3, %s1252_s17 }
  0x10   : > { %v1753_v5 = vld [vmem:[%s1833_s20] sm:$0xff]   ;;  %v1755_v7 = vld [vmem:[%s1833_s20 + $0x8] sm:$0xff]   ;;  %v1757_v9 = vld [vmem:[%s1833_s20 + $0x10] sm:$0xff]  }
  0x11   : > { %v1754_v6 = vld [vmem:[%s1833_s20 + $0x80] sm:$0xff]   ;;  %1677 = vmatprep.mubr.msk.bf16.mxu0 %vm413_vm2, %v1753_v5  ;;  %v1756_v8 = vld [vmem:[%s1833_s20 + $0x88] sm:$0xff]   ;;  %v1758_v10 = vld [vmem:[%s1833_s20 + $0x90] sm:$0xff]  }
  0x12   : > { %1709 = vmatprep.mubr.msk.bf16.mxu1 %vm413_vm2, %v1754_v6  ;;  %1678 = vmatmul.mubr.msk.bf16.vlgmr.msra.gmra.mrb[0].mxu0 %vm413_vm2, %v1755_v7  ;;  %v1759_v11 = vld [vmem:[%s1833_s20 + $0x18] sm:$0xff]   ;;  %v1761_v13 = vld [vmem:[%s1833_s20 + $0x20] sm:$0xff]   ;;  %v1763_v15 = vld [vmem:[%s1833_s20 + $0x28] sm:$0xff]  }
  0x13   : > { %1710 = vmatmul.mubr.msk.bf16.vlgmr.msra.gmra.mrb[0].mxu1 %vm413_vm2, %v1756_v8  ;;  %1681 = vmatprep.mubr.msk.bf16.mxu0 %vm413_vm2, %v1757_v9  ;;  %v1760_v12 = vld [vmem:[%s1833_s20 + $0x98] sm:$0xff]   ;;  %v1762_v14 = vld [vmem:[%s1833_s20 + $0xa0] sm:$0xff]   ;;  %v1764_v16 = vld [vmem:[%s1833_s20 + $0xa8] sm:$0xff]  }
  0x14   : > { %1713 = vmatprep.mubr.msk.bf16.mxu1 %vm413_vm2, %v1758_v10  ;;  %v1765_v17 = vld [vmem:[%s1833_s20 + $0x30] sm:$0xff]   ;;  %v1767_v19 = vld [vmem:[%s1833_s20 + $0x38] sm:$0xff]   ;;  %v1769_v21 = vld [vmem:[%s1833_s20 + $0x40] sm:$0xff]  }
  0x15   : > { %v1766_v18 = vld [vmem:[%s1833_s20 + $0xb0] sm:$0xff]   ;;  %v1768_v20 = vld [vmem:[%s1833_s20 + $0xb8] sm:$0xff]   ;;  %v1770_v22 = vld [vmem:[%s1833_s20 + $0xc0] sm:$0xff]  }
  0x16   : > { %v1771_v23 = vld [vmem:[%s1833_s20 + $0x48] sm:$0xff]   ;;  %v1773_v25 = vld [vmem:[%s1833_s20 + $0x50] sm:$0xff]   ;;  %v1775_v27 = vld [vmem:[%s1833_s20 + $0x58] sm:$0xff]  }
  0x17   : > { %v1772_v24 = vld [vmem:[%s1833_s20 + $0xc8] sm:$0xff]   ;;  %v1774_v26 = vld [vmem:[%s1833_s20 + $0xd0] sm:$0xff]   ;;  %v1776_v28 = vld [vmem:[%s1833_s20 + $0xd8] sm:$0xff]  }
  0x18   : > { %v1777_v29 = vld [vmem:[%s1833_s20 + $0x60] sm:$0xff]   ;;  %v1779_v31 = vld [vmem:[%s1833_s20 + $0x68] sm:$0xff]   ;;  %v1781_v33 = vld [vmem:[%s1833_s20 + $0x70] sm:$0xff]  }
  0x19   : > { %v1778_v30 = vld [vmem:[%s1833_s20 + $0xe0] sm:$0xff]   ;;  %v1780_v32 = vld [vmem:[%s1833_s20 + $0xe8] sm:$0xff]   ;;  %v1782_v34 = vld [vmem:[%s1833_s20 + $0xf0] sm:$0xff]  }
  0x1a   : > { %1682 = vmatmul.mubr.msk.bf16.gmra.mrb[4].mxu0 %vm413_vm2, %v1759_v11  ;;  %v1783_v35 = vld [vmem:[%s1833_s20 + $0x78] sm:$0xff]  }
  0x1b   : > { %1714 = vmatmul.mubr.msk.bf16.gmra.mrb[4].mxu1 %vm413_vm2, %v1760_v12  ;;  %1685 = vmatprep.mubr.msk.bf16.mxu0 %vm413_vm2, %v1761_v13  ;;  %v1784_v36 = vld [vmem:[%s1833_s20 + $0xf8] sm:$0xff]  }
  0x1c   : > { %1717 = vmatprep.mubr.msk.bf16.mxu1 %vm413_vm2, %v1762_v14 }
  0x22   : > { %1686 = vmatmul.mubr.msk.bf16.gmra.mrb[8].mxu0 %vm413_vm2, %v1763_v15 }
  0x23   : > { %1718 = vmatmul.mubr.msk.bf16.gmra.mrb[8].mxu1 %vm413_vm2, %v1764_v16  ;;  %1689 = vmatprep.mubr.msk.bf16.mxu0 %vm413_vm2, %v1765_v17 }
  0x24   : > { %1721 = vmatprep.mubr.msk.bf16.mxu1 %vm413_vm2, %v1766_v18 }
  0x2a   : > { %1690 = vmatmul.mubr.msk.bf16.gmra.mrb[12].mxu0 %vm413_vm2, %v1767_v19 }
  0x2b   : > { %1722 = vmatmul.mubr.msk.bf16.gmra.mrb[12].mxu1 %vm413_vm2, %v1768_v20  ;;  %1693 = vmatprep.mubr.msk.bf16.mxu0 %vm413_vm2, %v1769_v21 }
  0x2c   : > { %1725 = vmatprep.mubr.msk.bf16.mxu1 %vm413_vm2, %v1770_v22 }
  0x32   : > { %1694 = vmatmul.mubr.msk.bf16.gmra.mrb[16].mxu0 %vm413_vm2, %v1771_v23 }
  0x33   : > { %1726 = vmatmul.mubr.msk.bf16.gmra.mrb[16].mxu1 %vm413_vm2, %v1772_v24  ;;  %1697 = vmatprep.mubr.msk.bf16.mxu0 %vm413_vm2, %v1773_v25 }
  0x34   : > { %1729 = vmatprep.mubr.msk.bf16.mxu1 %vm413_vm2, %v1774_v26 }
  0x3a   : > { %1698 = vmatmul.mubr.msk.bf16.gmra.mrb[20].mxu0 %vm413_vm2, %v1775_v27 }
  0x3b   : > { %1730 = vmatmul.mubr.msk.bf16.gmra.mrb[20].mxu1 %vm413_vm2, %v1776_v28  ;;  %1701 = vmatprep.mubr.msk.bf16.mxu0 %vm413_vm2, %v1777_v29 }
  0x3c   : > { %1733 = vmatprep.mubr.msk.bf16.mxu1 %vm413_vm2, %v1778_v30 }
  0x42   : > { %1702 = vmatmul.mubr.msk.bf16.gmra.mrb[24].mxu0 %vm413_vm2, %v1779_v31 }
  0x43   : > { %1734 = vmatmul.mubr.msk.bf16.gmra.mrb[24].mxu1 %vm413_vm2, %v1780_v32  ;;  %1705 = vmatprep.mubr.msk.bf16.mxu0 %vm413_vm2, %v1781_v33 }
  0x44   : > { %1737 = vmatprep.mubr.msk.bf16.mxu1 %vm413_vm2, %v1782_v34 }
  0x4a   : > { %1706 = vmatmul.mubr.msk.bf16.gmra.mrb[28].mxu0 %vm413_vm2, %v1783_v35 }
  0x4b   : > { %1738 = vmatmul.mubr.msk.bf16.gmra.mrb[28].mxu1 %vm413_vm2, %v1784_v36 }
  0xe5   : > { %v1679_v38 = vpop.f32.mrb[0].mxu0 }
  0xe6   : > { %v560_v39 = vadd.f32 %v1679_v38, %v1902_v37  ;;  %v1711_v40 = vpop.f32.mrb[0].mxu1  ;;  %v551_v41 = vpop.f32.mrb[1].mxu0 }
  0xe7   : > { %v688_v42 = vadd.f32 %v1711_v40, %v1902_v37  ;;  %v552_v43 = vadd.f32 %v1902_v37, %v551_v41  ;;  %v679_v44 = vpop.f32.mrb[1].mxu1  ;;  %v1680_v45 = vpop.f32.mrb[2].mxu0 }
  0xe8   : > { %v680_v46 = vadd.f32 %v1902_v37, %v679_v44  ;;  %v563_v47 = vadd.f32 %v1680_v45, %v1902_v37  ;;  %v1712_v48 = vpop.f32.mrb[2].mxu1  ;;  %v554_v49 = vpop.f32.mrb[3].mxu0  ;;  %v808_v53 = vmax.f32 %v560_v39, 0.0 }
  0xe9   : > { %v691_v50 = vadd.f32 %v1712_v48, %v1902_v37  ;;  %v555_v51 = vadd.f32 %v1902_v37, %v554_v49  ;;  %v682_v52 = vpop.f32.mrb[3].mxu1  ;;  %v840_v56 = vmax.f32 %v688_v42, 0.0  ;;  %v806_v57 = vmax.f32 %v552_v43, 0.0 }
  0xea   : > { %v809_v54 = vmax.f32 %v563_v47, 0.0  ;;  %v683_v55 = vadd.f32 %v1902_v37, %v682_v52  ;;  %v838_v60 = vmax.f32 %v680_v46, 0.0 }
  0xeb   : > { %v841_v58 = vmax.f32 %v691_v50, 0.0  ;;  %v807_v59 = vmax.f32 %v555_v51, 0.0 }
  0xec   : > { %v1459_v61 = vpack.c.bf16 %v809_v54, %v808_v53  ;;  %v839_v62 = vmax.f32 %v683_v55, 0.0 }
  0xed   : > { %v1539_v63 = vpack.c.bf16 %v841_v58, %v840_v56  ;;  %v1454_v0 = vpack.c.bf16 %v807_v59, %v806_v57  ;;  %v1683_v1 = vpop.f32.mrb[4].mxu0 }
  0xee   : > { %1611 = vst [vmem:[%s1917_s25 + $0x8] sm:$0xff] %v1459_v61   ;;  %v1534_v2 = vpack.c.bf16 %v839_v62, %v838_v60  ;;  %v576_v3 = vadd.f32 %v1683_v1, %v1902_v37  ;;  %v1715_v4 = vpop.f32.mrb[4].mxu1  ;;  %v567_v5 = vpop.f32.mrb[5].mxu0 }
  0xef   : > { %1627 = vst [vmem:[%s1917_s25 + $0x88] sm:$0xff] %v1539_v63   ;;  %1455 = vst [vmem:[%s1917_s25] sm:$0xff] %v1454_v0   ;;  %v704_v6 = vadd.f32 %v1715_v4, %v1902_v37  ;;  %v568_v7 = vadd.f32 %v1902_v37, %v567_v5  ;;  %v695_v8 = vpop.f32.mrb[5].mxu1  ;;  %v1684_v9 = vpop.f32.mrb[6].mxu0 }
  0xf0   : > { %1626 = vst [vmem:[%s1917_s25 + $0x80] sm:$0xff] %v1534_v2   ;;  %v696_v10 = vadd.f32 %v1902_v37, %v695_v8  ;;  %v579_v11 = vadd.f32 %v1684_v9, %v1902_v37  ;;  %v1716_v12 = vpop.f32.mrb[6].mxu1  ;;  %v570_v13 = vpop.f32.mrb[7].mxu0  ;;  %v812_v17 = vmax.f32 %v576_v3, 0.0 }
  0xf1   : > { %v707_v14 = vadd.f32 %v1716_v12, %v1902_v37  ;;  %v571_v15 = vadd.f32 %v1902_v37, %v570_v13  ;;  %v698_v16 = vpop.f32.mrb[7].mxu1  ;;  %v844_v20 = vmax.f32 %v704_v6, 0.0  ;;  %v810_v21 = vmax.f32 %v568_v7, 0.0 }
  0xf2   : > { %v813_v18 = vmax.f32 %v579_v11, 0.0  ;;  %v699_v19 = vadd.f32 %v1902_v37, %v698_v16  ;;  %v842_v24 = vmax.f32 %v696_v10, 0.0 }
  0xf3   : > { %v845_v22 = vmax.f32 %v707_v14, 0.0  ;;  %v811_v23 = vmax.f32 %v571_v15, 0.0 }
  0xf4   : > { %v1469_v25 = vpack.c.bf16 %v813_v18, %v812_v17  ;;  %v843_v26 = vmax.f32 %v699_v19, 0.0 }
  0xf5   : > { %v1549_v27 = vpack.c.bf16 %v845_v22, %v844_v20  ;;  %v1464_v28 = vpack.c.bf16 %v811_v23, %v810_v21  ;;  %v1687_v29 = vpop.f32.mrb[8].mxu0 }
  0xf6   : > { %1613 = vst [vmem:[%s1917_s25 + $0x18] sm:$0xff] %v1469_v25   ;;  %v1544_v30 = vpack.c.bf16 %v843_v26, %v842_v24  ;;  %v592_v31 = vadd.f32 %v1687_v29, %v1902_v37  ;;  %v1719_v32 = vpop.f32.mrb[8].mxu1  ;;  %v583_v33 = vpop.f32.mrb[9].mxu0 }
  0xf7   : > { %1629 = vst [vmem:[%s1917_s25 + $0x98] sm:$0xff] %v1549_v27   ;;  %1612 = vst [vmem:[%s1917_s25 + $0x10] sm:$0xff] %v1464_v28   ;;  %v720_v34 = vadd.f32 %v1719_v32, %v1902_v37  ;;  %v584_v35 = vadd.f32 %v1902_v37, %v583_v33  ;;  %v711_v36 = vpop.f32.mrb[9].mxu1  ;;  %v1688_v38 = vpop.f32.mrb[10].mxu0 }
  0xf8   : > { %1628 = vst [vmem:[%s1917_s25 + $0x90] sm:$0xff] %v1544_v30   ;;  %v712_v39 = vadd.f32 %v1902_v37, %v711_v36  ;;  %v595_v40 = vadd.f32 %v1688_v38, %v1902_v37  ;;  %v1720_v41 = vpop.f32.mrb[10].mxu1  ;;  %v586_v42 = vpop.f32.mrb[11].mxu0  ;;  %v816_v46 = vmax.f32 %v592_v31, 0.0 }
  0xf9   : > { %v723_v43 = vadd.f32 %v1720_v41, %v1902_v37  ;;  %v587_v44 = vadd.f32 %v1902_v37, %v586_v42  ;;  %v714_v45 = vpop.f32.mrb[11].mxu1  ;;  %v848_v49 = vmax.f32 %v720_v34, 0.0  ;;  %v814_v50 = vmax.f32 %v584_v35, 0.0 }
  0xfa   : > { %v817_v47 = vmax.f32 %v595_v40, 0.0  ;;  %v715_v48 = vadd.f32 %v1902_v37, %v714_v45  ;;  %v846_v53 = vmax.f32 %v712_v39, 0.0 }
  0xfb   : > { %v849_v51 = vmax.f32 %v723_v43, 0.0  ;;  %v815_v52 = vmax.f32 %v587_v44, 0.0 }
  0xfc   : > { %v1479_v54 = vpack.c.bf16 %v817_v47, %v816_v46  ;;  %v847_v55 = vmax.f32 %v715_v48, 0.0 }
  0xfd   : > { %v1559_v56 = vpack.c.bf16 %v849_v51, %v848_v49  ;;  %v1474_v57 = vpack.c.bf16 %v815_v52, %v814_v50  ;;  %v1691_v58 = vpop.f32.mrb[12].mxu0 }
  0xfe   : > { %1615 = vst [vmem:[%s1917_s25 + $0x28] sm:$0xff] %v1479_v54   ;;  %v1554_v59 = vpack.c.bf16 %v847_v55, %v846_v53  ;;  %v608_v60 = vadd.f32 %v1691_v58, %v1902_v37  ;;  %v1723_v61 = vpop.f32.mrb[12].mxu1  ;;  %v599_v62 = vpop.f32.mrb[13].mxu0 }
  0xff   : > { %1631 = vst [vmem:[%s1917_s25 + $0xa8] sm:$0xff] %v1559_v56   ;;  %1614 = vst [vmem:[%s1917_s25 + $0x20] sm:$0xff] %v1474_v57   ;;  %v736_v63 = vadd.f32 %v1723_v61, %v1902_v37  ;;  %v600_v0 = vadd.f32 %v1902_v37, %v599_v62  ;;  %v727_v1 = vpop.f32.mrb[13].mxu1  ;;  %v1692_v2 = vpop.f32.mrb[14].mxu0 }
 0x100   : > { %1630 = vst [vmem:[%s1917_s25 + $0xa0] sm:$0xff] %v1554_v59   ;;  %v728_v3 = vadd.f32 %v1902_v37, %v727_v1  ;;  %v611_v4 = vadd.f32 %v1692_v2, %v1902_v37  ;;  %v1724_v5 = vpop.f32.mrb[14].mxu1  ;;  %v602_v6 = vpop.f32.mrb[15].mxu0  ;;  %v820_v10 = vmax.f32 %v608_v60, 0.0 }
 0x101   : > { %v739_v7 = vadd.f32 %v1724_v5, %v1902_v37  ;;  %v603_v8 = vadd.f32 %v1902_v37, %v602_v6  ;;  %v730_v9 = vpop.f32.mrb[15].mxu1  ;;  %v852_v13 = vmax.f32 %v736_v63, 0.0  ;;  %v818_v14 = vmax.f32 %v600_v0, 0.0 }
 0x102   : > { %v821_v11 = vmax.f32 %v611_v4, 0.0  ;;  %v731_v12 = vadd.f32 %v1902_v37, %v730_v9  ;;  %v850_v17 = vmax.f32 %v728_v3, 0.0 }
 0x103   : > { %v853_v15 = vmax.f32 %v739_v7, 0.0  ;;  %v819_v16 = vmax.f32 %v603_v8, 0.0 }
 0x104   : > { %v1489_v18 = vpack.c.bf16 %v821_v11, %v820_v10  ;;  %v851_v19 = vmax.f32 %v731_v12, 0.0 }
 0x105   : > { %v1569_v20 = vpack.c.bf16 %v853_v15, %v852_v13  ;;  %v1484_v21 = vpack.c.bf16 %v819_v16, %v818_v14  ;;  %v1695_v22 = vpop.f32.mrb[16].mxu0 }
 0x106   : > { %1617 = vst [vmem:[%s1917_s25 + $0x38] sm:$0xff] %v1489_v18   ;;  %v1564_v23 = vpack.c.bf16 %v851_v19, %v850_v17  ;;  %v624_v24 = vadd.f32 %v1695_v22, %v1902_v37  ;;  %v1727_v25 = vpop.f32.mrb[16].mxu1  ;;  %v615_v26 = vpop.f32.mrb[17].mxu0 }
 0x107   : > { %1633 = vst [vmem:[%s1917_s25 + $0xb8] sm:$0xff] %v1569_v20   ;;  %1616 = vst [vmem:[%s1917_s25 + $0x30] sm:$0xff] %v1484_v21   ;;  %v752_v27 = vadd.f32 %v1727_v25, %v1902_v37  ;;  %v616_v28 = vadd.f32 %v1902_v37, %v615_v26  ;;  %v743_v29 = vpop.f32.mrb[17].mxu1  ;;  %v1696_v30 = vpop.f32.mrb[18].mxu0 }
 0x108   : > { %1632 = vst [vmem:[%s1917_s25 + $0xb0] sm:$0xff] %v1564_v23   ;;  %v744_v31 = vadd.f32 %v1902_v37, %v743_v29  ;;  %v627_v32 = vadd.f32 %v1696_v30, %v1902_v37  ;;  %v1728_v33 = vpop.f32.mrb[18].mxu1  ;;  %v618_v34 = vpop.f32.mrb[19].mxu0  ;;  %v824_v39 = vmax.f32 %v624_v24, 0.0 }
 0x109   : > { %v755_v35 = vadd.f32 %v1728_v33, %v1902_v37  ;;  %v619_v36 = vadd.f32 %v1902_v37, %v618_v34  ;;  %v746_v38 = vpop.f32.mrb[19].mxu1  ;;  %v856_v42 = vmax.f32 %v752_v27, 0.0  ;;  %v822_v43 = vmax.f32 %v616_v28, 0.0 }
 0x10a   : > { %v825_v40 = vmax.f32 %v627_v32, 0.0  ;;  %v747_v41 = vadd.f32 %v1902_v37, %v746_v38  ;;  %v854_v46 = vmax.f32 %v744_v31, 0.0 }
 0x10b   : > { %v857_v44 = vmax.f32 %v755_v35, 0.0  ;;  %v823_v45 = vmax.f32 %v619_v36, 0.0 }
 0x10c   : > { %v1499_v47 = vpack.c.bf16 %v825_v40, %v824_v39  ;;  %v855_v48 = vmax.f32 %v747_v41, 0.0 }
 0x10d   : > { %v1579_v49 = vpack.c.bf16 %v857_v44, %v856_v42  ;;  %v1494_v50 = vpack.c.bf16 %v823_v45, %v822_v43  ;;  %v1699_v51 = vpop.f32.mrb[20].mxu0 }
 0x10e   : > { %1619 = vst [vmem:[%s1917_s25 + $0x48] sm:$0xff] %v1499_v47   ;;  %v1574_v52 = vpack.c.bf16 %v855_v48, %v854_v46  ;;  %v640_v53 = vadd.f32 %v1699_v51, %v1902_v37  ;;  %v1731_v54 = vpop.f32.mrb[20].mxu1  ;;  %v631_v55 = vpop.f32.mrb[21].mxu0 }
 0x10f   : > { %1635 = vst [vmem:[%s1917_s25 + $0xc8] sm:$0xff] %v1579_v49   ;;  %1618 = vst [vmem:[%s1917_s25 + $0x40] sm:$0xff] %v1494_v50   ;;  %v768_v56 = vadd.f32 %v1731_v54, %v1902_v37  ;;  %v632_v57 = vadd.f32 %v1902_v37, %v631_v55  ;;  %v759_v58 = vpop.f32.mrb[21].mxu1  ;;  %v1700_v59 = vpop.f32.mrb[22].mxu0 }
 0x110   : > { %1634 = vst [vmem:[%s1917_s25 + $0xc0] sm:$0xff] %v1574_v52   ;;  %v760_v60 = vadd.f32 %v1902_v37, %v759_v58  ;;  %v643_v61 = vadd.f32 %v1700_v59, %v1902_v37  ;;  %v1732_v62 = vpop.f32.mrb[22].mxu1  ;;  %v634_v63 = vpop.f32.mrb[23].mxu0  ;;  %v828_v3 = vmax.f32 %v640_v53, 0.0 }
 0x111   : > { %v771_v0 = vadd.f32 %v1732_v62, %v1902_v37  ;;  %v635_v1 = vadd.f32 %v1902_v37, %v634_v63  ;;  %v762_v2 = vpop.f32.mrb[23].mxu1  ;;  %v860_v6 = vmax.f32 %v768_v56, 0.0  ;;  %v826_v7 = vmax.f32 %v632_v57, 0.0 }
 0x112   : > { %v829_v4 = vmax.f32 %v643_v61, 0.0  ;;  %v763_v5 = vadd.f32 %v1902_v37, %v762_v2  ;;  %v858_v10 = vmax.f32 %v760_v60, 0.0 }
 0x113   : > { %v861_v8 = vmax.f32 %v771_v0, 0.0  ;;  %v827_v9 = vmax.f32 %v635_v1, 0.0 }
 0x114   : > { %v1509_v11 = vpack.c.bf16 %v829_v4, %v828_v3  ;;  %v859_v12 = vmax.f32 %v763_v5, 0.0 }
 0x115   : > { %v1589_v13 = vpack.c.bf16 %v861_v8, %v860_v6  ;;  %v1504_v14 = vpack.c.bf16 %v827_v9, %v826_v7  ;;  %v1703_v15 = vpop.f32.mrb[24].mxu0 }
 0x116   : > { %1621 = vst [vmem:[%s1917_s25 + $0x58] sm:$0xff] %v1509_v11   ;;  %v1584_v16 = vpack.c.bf16 %v859_v12, %v858_v10  ;;  %v656_v17 = vadd.f32 %v1703_v15, %v1902_v37  ;;  %v1735_v18 = vpop.f32.mrb[24].mxu1  ;;  %v647_v19 = vpop.f32.mrb[25].mxu0 }
 0x117   : > { %1637 = vst [vmem:[%s1917_s25 + $0xd8] sm:$0xff] %v1589_v13   ;;  %1620 = vst [vmem:[%s1917_s25 + $0x50] sm:$0xff] %v1504_v14   ;;  %v784_v20 = vadd.f32 %v1735_v18, %v1902_v37  ;;  %v648_v21 = vadd.f32 %v1902_v37, %v647_v19  ;;  %v775_v22 = vpop.f32.mrb[25].mxu1  ;;  %v1704_v23 = vpop.f32.mrb[26].mxu0 }
 0x118   : > { %1636 = vst [vmem:[%s1917_s25 + $0xd0] sm:$0xff] %v1584_v16   ;;  %v776_v24 = vadd.f32 %v1902_v37, %v775_v22  ;;  %v659_v25 = vadd.f32 %v1704_v23, %v1902_v37  ;;  %v1736_v26 = vpop.f32.mrb[26].mxu1  ;;  %v650_v27 = vpop.f32.mrb[27].mxu0  ;;  %v832_v31 = vmax.f32 %v656_v17, 0.0 }
 0x119   : > { %v787_v28 = vadd.f32 %v1736_v26, %v1902_v37  ;;  %v651_v29 = vadd.f32 %v1902_v37, %v650_v27  ;;  %v778_v30 = vpop.f32.mrb[27].mxu1  ;;  %v864_v34 = vmax.f32 %v784_v20, 0.0  ;;  %v830_v35 = vmax.f32 %v648_v21, 0.0 }
 0x11a   : > { %v833_v32 = vmax.f32 %v659_v25, 0.0  ;;  %v779_v33 = vadd.f32 %v1902_v37, %v778_v30  ;;  %v862_v39 = vmax.f32 %v776_v24, 0.0 }
 0x11b   : > { %v865_v36 = vmax.f32 %v787_v28, 0.0  ;;  %v831_v38 = vmax.f32 %v651_v29, 0.0 }
 0x11c   : > { %v1519_v40 = vpack.c.bf16 %v833_v32, %v832_v31  ;;  %v863_v41 = vmax.f32 %v779_v33, 0.0 }
 0x11d   : > { %v1599_v42 = vpack.c.bf16 %v865_v36, %v864_v34  ;;  %v1514_v43 = vpack.c.bf16 %v831_v38, %v830_v35  ;;  %v1707_v44 = vpop.f32.mrb[28].mxu0 }
 0x11e   : > { %1623 = vst [vmem:[%s1917_s25 + $0x68] sm:$0xff] %v1519_v40   ;;  %v1594_v45 = vpack.c.bf16 %v863_v41, %v862_v39  ;;  %v672_v46 = vadd.f32 %v1707_v44, %v1902_v37  ;;  %v1739_v47 = vpop.f32.mrb[28].mxu1  ;;  %v663_v48 = vpop.f32.mrb[29].mxu0 }
 0x11f   : > { %1639 = vst [vmem:[%s1917_s25 + $0xe8] sm:$0xff] %v1599_v42   ;;  %1622 = vst [vmem:[%s1917_s25 + $0x60] sm:$0xff] %v1514_v43   ;;  %v800_v49 = vadd.f32 %v1739_v47, %v1902_v37  ;;  %v664_v50 = vadd.f32 %v1902_v37, %v663_v48  ;;  %v791_v51 = vpop.f32.mrb[29].mxu1  ;;  %v1708_v52 = vpop.f32.mrb[30].mxu0 }
 0x120   : > { %1638 = vst [vmem:[%s1917_s25 + $0xe0] sm:$0xff] %v1594_v45   ;;  %v792_v53 = vadd.f32 %v1902_v37, %v791_v51  ;;  %v675_v54 = vadd.f32 %v1708_v52, %v1902_v37  ;;  %v1740_v55 = vpop.f32.mrb[30].mxu1  ;;  %v666_v56 = vpop.f32.mrb[31].mxu0  ;;  %v836_v60 = vmax.f32 %v672_v46, 0.0 }
 0x121   : > { %v803_v57 = vadd.f32 %v1740_v55, %v1902_v37  ;;  %v667_v58 = vadd.f32 %v1902_v37, %v666_v56  ;;  %v794_v59 = vpop.f32.mrb[31].mxu1  ;;  %v868_v63 = vmax.f32 %v800_v49, 0.0  ;;  %v834_v0 = vmax.f32 %v664_v50, 0.0 }
 0x122   : > { %v837_v61 = vmax.f32 %v675_v54, 0.0  ;;  %v795_v62 = vadd.f32 %v1902_v37, %v794_v59  ;;  %v866_v3 = vmax.f32 %v792_v53, 0.0 }
 0x123   : > { %v869_v1 = vmax.f32 %v803_v57, 0.0  ;;  %v835_v2 = vmax.f32 %v667_v58, 0.0 }
 0x124   : > { %v1529_v4 = vpack.c.bf16 %v837_v61, %v836_v60  ;;  %v867_v5 = vmax.f32 %v795_v62, 0.0 }
 0x125   : > { %v1609_v6 = vpack.c.bf16 %v869_v1, %v868_v63  ;;  %v1524_v7 = vpack.c.bf16 %v835_v2, %v834_v0 }
 0x126   : > { %1625 = vst [vmem:[%s1917_s25 + $0x78] sm:$0xff] %v1529_v4   ;;  %v1604_v8 = vpack.c.bf16 %v867_v5, %v866_v3 }
 0x127   : > { %1641 = vst [vmem:[%s1917_s25 + $0xf8] sm:$0xff] %v1609_v6   ;;  %1624 = vst [vmem:[%s1917_s25 + $0x70] sm:$0xff] %v1524_v7  }
 0x128   : > { %1640 = vst [vmem:[%s1917_s25 + $0xf0] sm:$0xff] %v1604_v8  }
 0x129 PF: > { %s13_s12 = sadd.s32 1, %s1791_s12  }
 0x12a   : > { %p10_p4 = scmp.ge.s32.totalorder %s13_s12, 4  }
 0x12c   :  { %12 = sbr.rel (!%p10_p4) target bundleno = 1 (0x1), region = 62 }

// kernel: model_forward.4
= control target key start
LH: loop header
LB: loop body
LE: loop exit
PB: predicated region body
PF: predicated region fallthrough
CT: control target
= control target key end

     0   :  { %v682_v0 = vmov 0   ;;  %vm270_vm0 = vcmask 130048   ;;  %s975_s1 = inlined_call_operand.vmem [shape: bf16[144,128], index: 1, kind: input, shape index: {}]   ;;  %s976_s0 = inlined_call_operand.vmem [shape: bf16[256,144], index: 0, kind: input, shape index: {}]   ;;  %s977_s2 = inlined_call_operand.vmem [shape: f32[1,128], index: 2, kind: input, shape index: {}]   ;;  %s978_s3 = inlined_call_operand.vmem [shape: f32[256,128], index: 3, kind: output, shape index: {}]  }
   0x1   :  { %319 = vmatprep.subr.bf16.mxu0 %v682_v0  ;;  %606 = vmatprep.subr.bf16.mxu1 %v682_v0  ;;  %v625_v1 = vld [vmem:[%s975_s1] sm:$0xff]   ;;  %v626_v2 = vld [vmem:[%s975_s1 + $0x8] sm:$0xff]   ;;  %v627_v3 = vld [vmem:[%s975_s1 + $0x10] sm:$0xff]  }
   0x2   :  { %320 = vmatpush1.bf16.msra.mxu0 %v625_v1  ;;  %615 = vmatpush1.bf16.msra.mxu1 %v625_v1  ;;  %v628_v4 = vld [vmem:[%s975_s1 + $0x18] sm:$0xff]   ;;  %v636_v5 = vld [vmem:[%s976_s0 + $0x4] ss:$8 sps:$4 sm:$0xff]   ;;  %v631_v9 = vld [vmem:[%s975_s1 + $0x30] sm:$0xff]  }
   0x3   :  { %321 = vmatprep.subr.bf16.mxu0 %v682_v0  ;;  %607 = vmatprep.subr.bf16.mxu1 %v682_v0  ;;  %v639_v6 = vld [vmem:[%s976_s0 + $0x84] ss:$8 sps:$4 sm:$0xff]   ;;  %v632_v10 = vld [vmem:[%s975_s1 + $0x38] sm:$0xff]   ;;  %v634_v12 = vld [vmem:[%s976_s0] ss:$8 sps:$4 sm:$0xff]  }
   0x4   :  { %590 = vmatprep.mubr.msk.bf16.mxu0 %vm270_vm0, %v636_v5  ;;  %598 = vmatprep.mubr.msk.bf16.mxu1 %vm270_vm0, %v639_v6  ;;  %v629_v7 = vld [vmem:[%s975_s1 + $0x20] sm:$0xff]   ;;  %v630_v8 = vld [vmem:[%s975_s1 + $0x28] sm:$0xff]   ;;  %v640_v14 = vld [vmem:[%s976_s0 + $0x14] ss:$8 sps:$4 sm:$0xff]  }
   0x5   :  { %v633_v11 = vld [vmem:[%s975_s1 + $0x40] sm:$0xff]   ;;  %v642_v15 = vld [vmem:[%s976_s0 + $0x94] ss:$8 sps:$4 sm:$0xff]   ;;  %v644_v16 = vld [vmem:[%s976_s0 + $0x10] ss:$8 sps:$4 sm:$0xff]  }
   0x6   :  { %322 = vmatpush1.bf16.msra.mxu0 %v626_v2  ;;  %616 = vmatpush1.bf16.msra.mxu1 %v626_v2  ;;  %v637_v13 = vld [vmem:[%s976_s0 + $0x80] ss:$8 sps:$4 sm:$0xff]   ;;  %v645_v17 = vld [vmem:[%s976_s0 + $0x90] ss:$8 sps:$4 sm:$0xff]   ;;  %v646_v18 = vld [vmem:[%s976_s0 + $0x24] ss:$8 sps:$4 sm:$0xff]  }
   0x7   :  { %323 = vmatprep.subr.bf16.mxu0 %v682_v0  ;;  %608 = vmatprep.subr.bf16.mxu1 %v682_v0  ;;  %v648_v19 = vld [vmem:[%s976_s0 + $0xa4] ss:$8 sps:$4 sm:$0xff]   ;;  %v650_v20 = vld [vmem:[%s976_s0 + $0x20] ss:$8 sps:$4 sm:$0xff]   ;;  %v652_v22 = vld [vmem:[%s976_s0 + $0x34] ss:$8 sps:$4 sm:$0xff]  }
   0x8   :  { %v651_v21 = vld [vmem:[%s976_s0 + $0xa0] ss:$8 sps:$4 sm:$0xff]   ;;  %v654_v23 = vld [vmem:[%s976_s0 + $0xb4] ss:$8 sps:$4 sm:$0xff]   ;;  %v656_v24 = vld [vmem:[%s976_s0 + $0x30] ss:$8 sps:$4 sm:$0xff]  }
   0x9   :  { %v657_v25 = vld [vmem:[%s976_s0 + $0xb0] ss:$8 sps:$4 sm:$0xff]   ;;  %v658_v26 = vld [vmem:[%s976_s0 + $0x44] ss:$8 sps:$4 sm:$0xff]   ;;  %v662_v28 = vld [vmem:[%s976_s0 + $0x40] ss:$8 sps:$4 sm:$0xff]  }
   0xa   :  { %324 = vmatpush1.bf16.msra.mxu0 %v627_v3  ;;  %617 = vmatpush1.bf16.msra.mxu1 %v627_v3  ;;  %v660_v27 = vld [vmem:[%s976_s0 + $0xc4] ss:$8 sps:$4 sm:$0xff]   ;;  %v663_v29 = vld [vmem:[%s976_s0 + $0xc0] ss:$8 sps:$4 sm:$0xff]   ;;  %v664_v30 = vld [vmem:[%s976_s0 + $0x54] ss:$8 sps:$4 sm:$0xff]  }
   0xb   :  { %325 = vmatprep.subr.bf16.mxu0 %v682_v0  ;;  %609 = vmatprep.subr.bf16.mxu1 %v682_v0  ;;  %v666_v31 = vld [vmem:[%s976_s0 + $0xd4] ss:$8 sps:$4 sm:$0xff]   ;;  %v668_v32 = vld [vmem:[%s976_s0 + $0x50] ss:$8 sps:$4 sm:$0xff]   ;;  %v670_v34 = vld [vmem:[%s976_s0 + $0x64] ss:$8 sps:$4 sm:$0xff]  }
   0xc   :  { %v669_v33 = vld [vmem:[%s976_s0 + $0xd0] ss:$8 sps:$4 sm:$0xff]   ;;  %v672_v35 = vld [vmem:[%s976_s0 + $0xe4] ss:$8 sps:$4 sm:$0xff]   ;;  %v674_v36 = vld [vmem:[%s976_s0 + $0x60] ss:$8 sps:$4 sm:$0xff]  }
   0xd   :  { %v675_v37 = vld [vmem:[%s976_s0 + $0xe0] ss:$8 sps:$4 sm:$0xff]   ;;  %v676_v38 = vld [vmem:[%s976_s0 + $0x74] ss:$8 sps:$4 sm:$0xff]   ;;  %v680_v40 = vld [vmem:[%s976_s0 + $0x70] ss:$8 sps:$4 sm:$0xff]  }
   0xe   :  { %326 = vmatpush1.bf16.msra.mxu0 %v628_v4  ;;  %618 = vmatpush1.bf16.msra.mxu1 %v628_v4  ;;  %v678_v39 = vld [vmem:[%s976_s0 + $0xf4] ss:$8 sps:$4 sm:$0xff]   ;;  %v681_v41 = vld [vmem:[%s976_s0 + $0xf0] ss:$8 sps:$4 sm:$0xff]   ;;  %v845_v42 = vld [vmem:[%s977_s2] ss:$0 sm:$0xff] }
   0xf   :  { %327 = vmatprep.subr.bf16.mxu0 %v682_v0  ;;  %610 = vmatprep.subr.bf16.mxu1 %v682_v0 }
  0x12   :  { %328 = vmatpush1.bf16.msra.mxu0 %v629_v7  ;;  %619 = vmatpush1.bf16.msra.mxu1 %v629_v7 }
  0x13   :  { %329 = vmatprep.subr.bf16.mxu0 %v682_v0  ;;  %611 = vmatprep.subr.bf16.mxu1 %v682_v0 }
  0x16   :  { %330 = vmatpush1.bf16.msra.mxu0 %v630_v8  ;;  %620 = vmatpush1.bf16.msra.mxu1 %v630_v8 }
  0x17   :  { %331 = vmatprep.subr.bf16.mxu0 %v682_v0  ;;  %612 = vmatprep.subr.bf16.mxu1 %v682_v0 }
  0x1a   :  { %332 = vmatpush1.bf16.msra.mxu0 %v631_v9  ;;  %621 = vmatpush1.bf16.msra.mxu1 %v631_v9 }
  0x1b   :  { %333 = vmatprep.subr.bf16.mxu0 %v682_v0  ;;  %613 = vmatprep.subr.bf16.mxu1 %v682_v0 }
  0x1e   :  { %334 = vmatpush1.bf16.msra.mxu0 %v632_v10  ;;  %622 = vmatpush1.bf16.msra.mxu1 %v632_v10 }
  0x1f   :  { %335 = vmatprep.subr.bf16.mxu0 %v682_v0  ;;  %614 = vmatprep.subr.bf16.mxu1 %v682_v0 }
  0x22   :  { %336 = vmatpush1.bf16.msra.mxu0 %v633_v11  ;;  %623 = vmatpush1.bf16.msra.mxu1 %v633_v11 }
  0x25   :  { %352 = vmatmul.mubr.bf16.vlgmr.msra.gmra.mrb[0].mxu0 %v634_v12  ;;  %416 = vmatmul.mubr.bf16.vlgmr.msra.gmra.mrb[0].mxu1 %v637_v13 }
  0x26   :  { %591 = vmatprep.mubr.msk.bf16.mxu0 %vm270_vm0, %v640_v14  ;;  %599 = vmatprep.mubr.msk.bf16.mxu1 %vm270_vm0, %v642_v15 }
  0x2d   :  { %360 = vmatmul.mubr.bf16.gmra.mrb[4].mxu0 %v644_v16  ;;  %424 = vmatmul.mubr.bf16.gmra.mrb[4].mxu1 %v645_v17 }
  0x2e   :  { %592 = vmatprep.mubr.msk.bf16.mxu0 %vm270_vm0, %v646_v18  ;;  %600 = vmatprep.mubr.msk.bf16.mxu1 %vm270_vm0, %v648_v19 }
  0x35   :  { %368 = vmatmul.mubr.bf16.gmra.mrb[8].mxu0 %v650_v20  ;;  %432 = vmatmul.mubr.bf16.gmra.mrb[8].mxu1 %v651_v21 }
  0x36   :  { %593 = vmatprep.mubr.msk.bf16.mxu0 %vm270_vm0, %v652_v22  ;;  %601 = vmatprep.mubr.msk.bf16.mxu1 %vm270_vm0, %v654_v23 }
  0x3d   :  { %376 = vmatmul.mubr.bf16.gmra.mrb[12].mxu0 %v656_v24  ;;  %440 = vmatmul.mubr.bf16.gmra.mrb[12].mxu1 %v657_v25 }
  0x3e   :  { %594 = vmatprep.mubr.msk.bf16.mxu0 %vm270_vm0, %v658_v26  ;;  %602 = vmatprep.mubr.msk.bf16.mxu1 %vm270_vm0, %v660_v27 }
  0x45   :  { %384 = vmatmul.mubr.bf16.gmra.mrb[16].mxu0 %v662_v28  ;;  %448 = vmatmul.mubr.bf16.gmra.mrb[16].mxu1 %v663_v29 }
  0x46   :  { %595 = vmatprep.mubr.msk.bf16.mxu0 %vm270_vm0, %v664_v30  ;;  %603 = vmatprep.mubr.msk.bf16.mxu1 %vm270_vm0, %v666_v31 }
  0x4d   :  { %392 = vmatmul.mubr.bf16.gmra.mrb[20].mxu0 %v668_v32  ;;  %456 = vmatmul.mubr.bf16.gmra.mrb[20].mxu1 %v669_v33 }
  0x4e   :  { %596 = vmatprep.mubr.msk.bf16.mxu0 %vm270_vm0, %v670_v34  ;;  %604 = vmatprep.mubr.msk.bf16.mxu1 %vm270_vm0, %v672_v35 }
  0x55   :  { %400 = vmatmul.mubr.bf16.gmra.mrb[24].mxu0 %v674_v36  ;;  %464 = vmatmul.mubr.bf16.gmra.mrb[24].mxu1 %v675_v37 }
  0x56   :  { %597 = vmatprep.mubr.msk.bf16.mxu0 %vm270_vm0, %v676_v38  ;;  %605 = vmatprep.mubr.msk.bf16.mxu1 %vm270_vm0, %v678_v39 }
  0x5d   :  { %408 = vmatmul.mubr.bf16.gmra.mrb[28].mxu0 %v680_v40  ;;  %472 = vmatmul.mubr.bf16.gmra.mrb[28].mxu1 %v681_v41 }
  0xf8   :  { %v353_v43 = vpop.f32.mrb[0].mxu0  ;;  %v417_v44 = vpop.f32.mrb[0].mxu1 }
  0xf9   :  { %v354_v45 = vadd.f32 %v845_v42, %v353_v43  ;;  %v418_v46 = vadd.f32 %v845_v42, %v417_v44  ;;  %v355_v47 = vpop.f32.mrb[1].mxu0  ;;  %v419_v48 = vpop.f32.mrb[1].mxu1 }
  0xfa   :  { %v356_v49 = vpop.f32.mrb[2].mxu0  ;;  %v420_v50 = vpop.f32.mrb[2].mxu1 }
  0xfb   :  { %v480_v51 = vmax.f32 %v354_v45, 0.0  ;;  %v496_v52 = vmax.f32 %v418_v46, 0.0  ;;  %v357_v53 = vadd.f32 %v845_v42, %v356_v49  ;;  %v421_v54 = vadd.f32 %v845_v42, %v420_v50  ;;  %v358_v55 = vpop.f32.mrb[3].mxu0  ;;  %v422_v56 = vpop.f32.mrb[3].mxu1 }
  0xfd   :  { %512 = vst [vmem:[%s978_s3] sm:$0xff] %v480_v51  ;;  %528 = vst [vmem:[%s978_s3 + $0x80] sm:$0xff] %v496_v52  ;;  %v481_v57 = vmax.f32 %v357_v53, 0.0  ;;  %v497_v58 = vmax.f32 %v421_v54, 0.0 }
  0xff   :  { %513 = vst [vmem:[%s978_s3 + $0x8] sm:$0xff] %v481_v57  ;;  %529 = vst [vmem:[%s978_s3 + $0x88] sm:$0xff] %v497_v58 }
 0x100   :  { %v361_v59 = vpop.f32.mrb[4].mxu0  ;;  %v425_v60 = vpop.f32.mrb[4].mxu1 }
 0x101   :  { %v362_v61 = vadd.f32 %v845_v42, %v361_v59  ;;  %v426_v62 = vadd.f32 %v845_v42, %v425_v60  ;;  %v363_v63 = vpop.f32.mrb[5].mxu0  ;;  %v427_v0 = vpop.f32.mrb[5].mxu1 }
 0x102   :  { %v364_v1 = vpop.f32.mrb[6].mxu0  ;;  %v428_v2 = vpop.f32.mrb[6].mxu1 }
 0x103   :  { %v482_v3 = vmax.f32 %v362_v61, 0.0  ;;  %v498_v4 = vmax.f32 %v426_v62, 0.0  ;;  %v365_v5 = vadd.f32 %v845_v42, %v364_v1  ;;  %v429_v6 = vadd.f32 %v845_v42, %v428_v2  ;;  %v366_v7 = vpop.f32.mrb[7].mxu0  ;;  %v430_v8 = vpop.f32.mrb[7].mxu1 }
 0x105   :  { %514 = vst [vmem:[%s978_s3 + $0x10] sm:$0xff] %v482_v3  ;;  %530 = vst [vmem:[%s978_s3 + $0x90] sm:$0xff] %v498_v4  ;;  %v483_v9 = vmax.f32 %v365_v5, 0.0  ;;  %v499_v10 = vmax.f32 %v429_v6, 0.0 }
 0x107   :  { %515 = vst [vmem:[%s978_s3 + $0x18] sm:$0xff] %v483_v9  ;;  %531 = vst [vmem:[%s978_s3 + $0x98] sm:$0xff] %v499_v10 }
 0x108   :  { %v369_v11 = vpop.f32.mrb[8].mxu0  ;;  %v433_v12 = vpop.f32.mrb[8].mxu1 }
 0x109   :  { %v370_v13 = vadd.f32 %v845_v42, %v369_v11  ;;  %v434_v14 = vadd.f32 %v845_v42, %v433_v12  ;;  %v371_v15 = vpop.f32.mrb[9].mxu0  ;;  %v435_v16 = vpop.f32.mrb[9].mxu1 }
 0x10a   :  { %v372_v17 = vpop.f32.mrb[10].mxu0  ;;  %v436_v18 = vpop.f32.mrb[10].mxu1 }
 0x10b   :  { %v484_v19 = vmax.f32 %v370_v13, 0.0  ;;  %v500_v20 = vmax.f32 %v434_v14, 0.0  ;;  %v373_v21 = vadd.f32 %v845_v42, %v372_v17  ;;  %v437_v22 = vadd.f32 %v845_v42, %v436_v18  ;;  %v374_v23 = vpop.f32.mrb[11].mxu0  ;;  %v438_v24 = vpop.f32.mrb[11].mxu1 }
 0x10d   :  { %516 = vst [vmem:[%s978_s3 + $0x20] sm:$0xff] %v484_v19  ;;  %532 = vst [vmem:[%s978_s3 + $0xa0] sm:$0xff] %v500_v20  ;;  %v485_v25 = vmax.f32 %v373_v21, 0.0  ;;  %v501_v26 = vmax.f32 %v437_v22, 0.0 }
 0x10f   :  { %517 = vst [vmem:[%s978_s3 + $0x28] sm:$0xff] %v485_v25  ;;  %533 = vst [vmem:[%s978_s3 + $0xa8] sm:$0xff] %v501_v26 }
 0x110   :  { %v377_v27 = vpop.f32.mrb[12].mxu0  ;;  %v441_v28 = vpop.f32.mrb[12].mxu1 }
 0x111   :  { %v378_v29 = vadd.f32 %v845_v42, %v377_v27  ;;  %v442_v30 = vadd.f32 %v845_v42, %v441_v28  ;;  %v379_v31 = vpop.f32.mrb[13].mxu0  ;;  %v443_v32 = vpop.f32.mrb[13].mxu1 }
 0x112   :  { %v380_v33 = vpop.f32.mrb[14].mxu0  ;;  %v444_v34 = vpop.f32.mrb[14].mxu1 }
 0x113   :  { %v486_v35 = vmax.f32 %v378_v29, 0.0  ;;  %v502_v36 = vmax.f32 %v442_v30, 0.0  ;;  %v381_v37 = vadd.f32 %v845_v42, %v380_v33  ;;  %v445_v38 = vadd.f32 %v845_v42, %v444_v34  ;;  %v382_v39 = vpop.f32.mrb[15].mxu0  ;;  %v446_v40 = vpop.f32.mrb[15].mxu1 }
 0x115   :  { %518 = vst [vmem:[%s978_s3 + $0x30] sm:$0xff] %v486_v35  ;;  %534 = vst [vmem:[%s978_s3 + $0xb0] sm:$0xff] %v502_v36  ;;  %v487_v41 = vmax.f32 %v381_v37, 0.0  ;;  %v503_v43 = vmax.f32 %v445_v38, 0.0 }
 0x117   :  { %519 = vst [vmem:[%s978_s3 + $0x38] sm:$0xff] %v487_v41  ;;  %535 = vst [vmem:[%s978_s3 + $0xb8] sm:$0xff] %v503_v43 }
 0x118   :  { %v385_v44 = vpop.f32.mrb[16].mxu0  ;;  %v449_v45 = vpop.f32.mrb[16].mxu1 }
 0x119   :  { %v386_v46 = vadd.f32 %v845_v42, %v385_v44  ;;  %v450_v47 = vadd.f32 %v845_v42, %v449_v45  ;;  %v387_v48 = vpop.f32.mrb[17].mxu0  ;;  %v451_v49 = vpop.f32.mrb[17].mxu1 }
 0x11a   :  { %v388_v50 = vpop.f32.mrb[18].mxu0  ;;  %v452_v51 = vpop.f32.mrb[18].mxu1 }
 0x11b   :  { %v488_v52 = vmax.f32 %v386_v46, 0.0  ;;  %v504_v53 = vmax.f32 %v450_v47, 0.0  ;;  %v389_v54 = vadd.f32 %v845_v42, %v388_v50  ;;  %v453_v55 = vadd.f32 %v845_v42, %v452_v51  ;;  %v390_v56 = vpop.f32.mrb[19].mxu0  ;;  %v454_v57 = vpop.f32.mrb[19].mxu1 }
 0x11d   :  { %520 = vst [vmem:[%s978_s3 + $0x40] sm:$0xff] %v488_v52  ;;  %536 = vst [vmem:[%s978_s3 + $0xc0] sm:$0xff] %v504_v53  ;;  %v489_v58 = vmax.f32 %v389_v54, 0.0  ;;  %v505_v59 = vmax.f32 %v453_v55, 0.0 }
 0x11f   :  { %521 = vst [vmem:[%s978_s3 + $0x48] sm:$0xff] %v489_v58  ;;  %537 = vst [vmem:[%s978_s3 + $0xc8] sm:$0xff] %v505_v59 }
 0x120   :  { %v393_v60 = vpop.f32.mrb[20].mxu0  ;;  %v457_v61 = vpop.f32.mrb[20].mxu1 }
 0x121   :  { %v394_v62 = vadd.f32 %v845_v42, %v393_v60  ;;  %v458_v63 = vadd.f32 %v845_v42, %v457_v61  ;;  %v395_v0 = vpop.f32.mrb[21].mxu0  ;;  %v459_v1 = vpop.f32.mrb[21].mxu1 }
 0x122   :  { %v396_v2 = vpop.f32.mrb[22].mxu0  ;;  %v460_v3 = vpop.f32.mrb[22].mxu1 }
 0x123   :  { %v490_v4 = vmax.f32 %v394_v62, 0.0  ;;  %v506_v5 = vmax.f32 %v458_v63, 0.0  ;;  %v397_v6 = vadd.f32 %v845_v42, %v396_v2  ;;  %v461_v7 = vadd.f32 %v845_v42, %v460_v3  ;;  %v398_v8 = vpop.f32.mrb[23].mxu0  ;;  %v462_v9 = vpop.f32.mrb[23].mxu1 }
 0x125   :  { %522 = vst [vmem:[%s978_s3 + $0x50] sm:$0xff] %v490_v4  ;;  %538 = vst [vmem:[%s978_s3 + $0xd0] sm:$0xff] %v506_v5  ;;  %v491_v10 = vmax.f32 %v397_v6, 0.0  ;;  %v507_v11 = vmax.f32 %v461_v7, 0.0 }
 0x127   :  { %523 = vst [vmem:[%s978_s3 + $0x58] sm:$0xff] %v491_v10  ;;  %539 = vst [vmem:[%s978_s3 + $0xd8] sm:$0xff] %v507_v11 }
 0x128   :  { %v401_v12 = vpop.f32.mrb[24].mxu0  ;;  %v465_v13 = vpop.f32.mrb[24].mxu1 }
 0x129   :  { %v402_v14 = vadd.f32 %v845_v42, %v401_v12  ;;  %v466_v15 = vadd.f32 %v845_v42, %v465_v13  ;;  %v403_v16 = vpop.f32.mrb[25].mxu0  ;;  %v467_v17 = vpop.f32.mrb[25].mxu1 }
 0x12a   :  { %v404_v18 = vpop.f32.mrb[26].mxu0  ;;  %v468_v19 = vpop.f32.mrb[26].mxu1 }
 0x12b   :  { %v492_v20 = vmax.f32 %v402_v14, 0.0  ;;  %v508_v21 = vmax.f32 %v466_v15, 0.0  ;;  %v405_v22 = vadd.f32 %v845_v42, %v404_v18  ;;  %v469_v23 = vadd.f32 %v845_v42, %v468_v19  ;;  %v406_v24 = vpop.f32.mrb[27].mxu0  ;;  %v470_v25 = vpop.f32.mrb[27].mxu1 }
 0x12d   :  { %524 = vst [vmem:[%s978_s3 + $0x60] sm:$0xff] %v492_v20  ;;  %540 = vst [vmem:[%s978_s3 + $0xe0] sm:$0xff] %v508_v21  ;;  %v493_v26 = vmax.f32 %v405_v22, 0.0  ;;  %v509_v27 = vmax.f32 %v469_v23, 0.0 }
 0x12f   :  { %525 = vst [vmem:[%s978_s3 + $0x68] sm:$0xff] %v493_v26  ;;  %541 = vst [vmem:[%s978_s3 + $0xe8] sm:$0xff] %v509_v27 }
 0x130   :  { %v409_v28 = vpop.f32.mrb[28].mxu0  ;;  %v473_v29 = vpop.f32.mrb[28].mxu1 }
 0x131   :  { %v410_v30 = vadd.f32 %v845_v42, %v409_v28  ;;  %v474_v31 = vadd.f32 %v845_v42, %v473_v29  ;;  %v411_v32 = vpop.f32.mrb[29].mxu0  ;;  %v475_v33 = vpop.f32.mrb[29].mxu1 }
 0x132   :  { %v412_v34 = vpop.f32.mrb[30].mxu0  ;;  %v476_v35 = vpop.f32.mrb[30].mxu1 }
 0x133   :  { %v494_v36 = vmax.f32 %v410_v30, 0.0  ;;  %v510_v37 = vmax.f32 %v474_v31, 0.0  ;;  %v413_v38 = vadd.f32 %v845_v42, %v412_v34  ;;  %v477_v39 = vadd.f32 %v845_v42, %v476_v35  ;;  %v414_v40 = vpop.f32.mrb[31].mxu0  ;;  %v478_v41 = vpop.f32.mrb[31].mxu1 }
 0x135   :  { %526 = vst [vmem:[%s978_s3 + $0x70] sm:$0xff] %v494_v36  ;;  %542 = vst [vmem:[%s978_s3 + $0xf0] sm:$0xff] %v510_v37  ;;  %v495_v43 = vmax.f32 %v413_v38, 0.0  ;;  %v511_v44 = vmax.f32 %v477_v39, 0.0 }
 0x137   :  { %527 = vst [vmem:[%s978_s3 + $0x78] sm:$0xff] %v495_v43  ;;  %543 = vst [vmem:[%s978_s3 + $0xf8] sm:$0xff] %v511_v44 }

// kernel: model_forward.5
= control target key start
LH: loop header
LB: loop body
LE: loop exit
PB: predicated region body
PF: predicated region fallthrough
CT: control target
= control target key end

     0   :  { %16 = vsyncpa [#allocation6], 0  ;;  %s1967_s0 = inlined_call_operand.vmem [shape: f32[9,2,128], index: 0, kind: input, shape index: {}]   ;;  %s1968_s1 = inlined_call_operand.vmem [shape: bf16[2,16,128], index: 1, kind: input, shape index: {}]   ;;  %s1969_s2 = inlined_call_operand.vmem [shape: bf16[128,32], index: 2, kind: input, shape index: {}]   ;;  %s1970_s3 = inlined_call_operand.vmem [shape: bf16[32,32], index: 3, kind: input, shape index: {}]   ;;  %s1971_s4 = inlined_call_operand.vmem [shape: f32[1,32], index: 4, kind: input, shape index: {}]   ;;  %s1972_s5 = inlined_call_operand.vmem [shape: f32[1,32], index: 5, kind: input, shape index: {}]   ;;  %s1973_s6 = inlined_call_operand.vmem [shape: bf16[128,128], index: 6, kind: input, shape index: {}]   ;;  %s1974_s7 = inlined_call_operand.vmem [shape: bf16[32,128], index: 7, kind: input, shape index: {}]   ;;  %s1975_s8 = inlined_call_operand.vmem [shape: f32[1,128], index: 8, kind: input, shape index: {}]   ;;  %s1976_s9 = inlined_call_operand.vmem [shape: bf16[32,128], index: 9, kind: input, shape index: {}]   ;;  %s1977_s10 = inlined_call_operand.vmem [shape: f32[1,128], index: 10, kind: input, shape index: {}]   ;;  %s1978_s11 = inlined_call_operand.hbm [shape: f32[9,2,128], index: 11, kind: output, shape index: {}]  }
   0x1   :  { %18 = vsyncpa [#allocation6 + $0x1], 0  ;;  %s1663_s17 = smov 0   ;;  %s1665_s18 = smov 0  }
   0x2   :  { %s1667_s19 = smov 0   ;;  %s1669_s20 = smov 0  }
   0x3 LB: > { %s1684_s21 = sadd.s32 4294967295, %s1592_s20   ;;  %s1276_s22 = sadd.s32 4294967294, %s1592_s20   ;;  %s1592_s20 = sphi %s1669_s20, %s1988_s20   ;;  %s1588_s19 = sphi %s1667_s19, %s1987_s19   ;;  %s1584_s18 = sphi %s1665_s18, %s1986_s18   ;;  %s1580_s17 = sphi %s1663_s17, %s1985_s17  }
   0x4   : > { %s1688_s23 = sadd.s32 1, %s1592_s20   ;;  %s267_s24 = sadd.s32 1, %s1588_s19 }
   0x5   : > { %s264_s25 = ssub.s32 %s1592_s20, %s1688_s23  ;;  %p277_p0 = scmp.ne.s32.totalorder %s1588_s19, %s1584_s18 }
   0x6   : > { %p265_p1 = scmp.eq.s32.totalorder %s264_s25, 0  ;;  %p278_p2 = scmp.eq.s32.totalorder %s1684_s21, 8 }
   0x7   : > { %p283_p3 = scmp.ne.s32.totalorder %s1584_s18, %s1580_s17  ;;  %p284_p4 = scmp.eq.s32.totalorder %s1276_s22, 8 }
   0x8   : > { %s1699_s26 = scalar_select %p265_p1, %s1588_s19, %s267_s24  }
   0x9   : > { %p1701_p5 = por %p278_p2, %p277_p0  ;;  %p1705_p6 = por %p284_p4, %p283_p3 }
   0xa   : > { %1980 = sst [smem:[#allocation8_spill]] %s1699_s26  ;;  %p1279_p7 = scmp.ge.s32.totalorder %s1592_s20, 1 }
   0xb   : > { %p339_p8 = scmp.lt.s32.totalorder %s1592_s20, 10 }
   0xd   : > { %p340_p9 = pnand %p1279_p7, %p339_p8 }
   0xe   : > { %s1979_s29 = sand.u32 (!%p340_p9), 1, %s1584_s18   ;;  %p378_p10 = scmp.lt.s32.totalorder (!%p340_p9), %s1684_s21, 8  ;;  %v1716_v0 = vld [vmem:[%s1968_s1] sm:$0xf] (!%p340_p9)  ;;  %v1721_v1 = vld [vmem:[%s1968_s1 + $0x4] sm:$0xf] (!%p340_p9) }
   0xf   : > { %343 = sbr.rel (%p340_p9) target bundleno = 2433 (0x981), region = 64  ;;  %s1725_s15 = sshll.u32 (!%p340_p9), %s1979_s29, 1  ;;  %v1730_v2 = vld [vmem:[%s1968_s1 + $0x8] sm:$0xf] (!%p340_p9)  ;;  %v1735_v3 = vld [vmem:[%s1968_s1 + $0xc] sm:$0xf] (!%p340_p9) }
  0x10   : > { %s377_s29 = scalar_lea.vmem (!%p340_p9), [#allocation5], %s1725_s15  ;;  %p1282_p11 = scmp.ne.s32.totalorder (!%p340_p9), %s1684_s21, 0 }
  0x16   : > { %s379_s30 = scalar_select %p378_p10, %s1684_s21, 8 }
  0x17   : > { %390 = sbr.rel (%p1282_p11) target bundleno = 272 (0x110), region = 68  ;;  %vm391_vm0 = vcmask (!%p1282_p11), 254976   ;;  %v1283_v4 = vcombine.low (!%p1282_p11), %v1716_v0, %v1721_v1  ;;  %v1594_v5 = vmov (!%p1282_p11), 0.0   ;;  %v1478_v6 = vld [vmem:[%s1969_s2] sm:$0xff] (!%p1282_p11)   ;;  %v1479_v7 = vld [vmem:[%s1969_s2 + $0x8] sm:$0xff] (!%p1282_p11)   ;;  %v1480_v8 = vld [vmem:[%s1969_s2 + $0x10] sm:$0xff] (!%p1282_p11)   ;;  %v1284_v14 = vcombine.low (!%p1282_p11), %v1730_v2, %v1735_v3 }
  0x18   : > { %s1281_s12 = sshll.u32 %s379_s30, 1  ;;  %392 = vst.msk [vmem:[#allocation2] sm:$0x3] (!%p1282_p11), %vm391_vm0, %v1594_v5  ;;  %393 = vst.msk [vmem:[#allocation3] sm:$0x3] (!%p1282_p11), %vm391_vm0, %v1594_v5  ;;  %1355 = vmatprep.subr.bf16.mxu0 (!%p1282_p11), %v1478_v6  ;;  %v1481_v9 = vld [vmem:[%s1969_s2 + $0x18] sm:$0xff] (!%p1282_p11)  }
  0x19   : > { %s1741_s14 = scalar_lea.vmem %s1967_s0, %s1281_s12  ;;  %1371 = vmatprep.mubr.bf16.mxu0 (!%p1282_p11), %v1283_v4  ;;  %1356 = vmatpush3.bf16.msra.mxu0 (!%p1282_p11), %v1478_v6  ;;  %v1482_v10 = vld [vmem:[%s1969_s2 + $0x20] sm:$0xff] (!%p1282_p11)   ;;  %v1483_v11 = vld [vmem:[%s1969_s2 + $0x28] sm:$0xff] (!%p1282_p11)   ;;  %v1484_v12 = vld [vmem:[%s1969_s2 + $0x30] sm:$0xff] (!%p1282_p11)   ;;  %vm519_vm1 = vcmask (!%p1282_p11), 261120  }
  0x1a   : > { %1357 = vmatprep.subr.bf16.mxu0 (!%p1282_p11), %v1479_v7  ;;  %v1485_v13 = vld [vmem:[%s1969_s2 + $0x38] sm:$0xff] (!%p1282_p11)  }
  0x1d   : > { %1358 = vmatpush3.bf16.msra.mxu0 (!%p1282_p11), %v1479_v7 }
  0x1e   : > { %1359 = vmatprep.subr.bf16.mxu0 %v1480_v8 }
  0x21   : > { %1360 = vmatpush3.bf16.msra.mxu0 %v1480_v8 }
  0x22   : > { %1361 = vmatprep.subr.bf16.mxu0 %v1481_v9 }
  0x25   : > { %1362 = vmatpush3.bf16.msra.mxu0 %v1481_v9 }
  0x26   : > { %1363 = vmatprep.subr.bf16.mxu0 %v1482_v10 }
  0x29   : > { %1364 = vmatpush3.bf16.msra.mxu0 %v1482_v10 }
  0x2a   : > { %1365 = vmatprep.subr.bf16.mxu0 %v1483_v11 }
  0x2d   : > { %1366 = vmatpush3.bf16.msra.mxu0 %v1483_v11 }
  0x2e   : > { %1367 = vmatprep.subr.bf16.mxu0 %v1484_v12 }
  0x31   : > { %1368 = vmatpush3.bf16.msra.mxu0 %v1484_v12 }
  0x32   : > { %1369 = vmatprep.subr.bf16.mxu0 %v1485_v13 }
  0x35   : > { %1370 = vmatpush3.bf16.msra.mxu0 %v1485_v13 }
  0x38   : > { %1372 = vmatmul.mubr.bf16.vlgmr.msra.gmra.mrb[0].mxu0 %v1284_v14 }
 0x10b   : > { %v1373_v15 = vpop.f32.mrb[0].mxu0 }
 0x10c   : > { %522 = vst.msk [vmem:[#allocation4 + $0x10] sm:$0xff] %vm519_vm1, %v1373_v15  ;;  %v504_v16 = vpop.f32.mrb[1].mxu0 }
 0x10d   : > { %520 = vst.msk [vmem:[#allocation4] sm:$0xff] %vm519_vm1, %v504_v16  ;;  %v1374_v17 = vpop.f32.mrb[2].mxu0 }
 0x10e   : > { %523 = vst.msk [vmem:[#allocation4 + $0x18] sm:$0xff] %vm519_vm1, %v1374_v17  ;;  %v507_v18 = vpop.f32.mrb[3].mxu0 }
 0x10f   : > { %521 = vst.msk [vmem:[#allocation4 + $0x8] sm:$0xff] %vm519_vm1, %v507_v18 }
 0x110 PF: > { %v1488_v19 = vld [vmem:[%s1970_s3] sm:$0xff]   ;;  %v1595_v20 = vmov 0.0   ;;  %v1489_v21 = vld [vmem:[%s1970_s3 + $0x8] sm:$0xff]   ;;  %vm1596_vm2 = vmmov 0   ;;  %vm550_vm3 = vcmask 261120   ;;  %v602_v26 = vlaneseq  ;;  %s1599_s26 = smov 32  }
 0x111   : > { %1375 = vmatprep.subr.bf16.mxu0 %v1595_v20  ;;  %1383 = vmatprep.subr.bf16.mxu1 %v1595_v20  ;;  %v524_v22 = vld [vmem:[#allocation2] sm:$0x3]  ;;  %v1597_v24 = vmov 1966171168   ;;  %vm677_vm4 = vcmask 130112   ;;  %vm688_vm5 = vcmask 1041409  }
 0x112   : > { %1376 = vmatpush3.bf16.msra.mxu0 %v1488_v19  ;;  %1379 = vmatprep.mubr.msk.bf16.mxu0 %vm1596_vm2, %v1595_v20  ;;  %v1786_v23 = vpack.c.bf16 %v524_v22, %v524_v22  ;;  %v600_v25 = vunpack.c.l.s4 %v1597_v24  ;;  %v1793_v28 = vshrl.u32 %v602_v26, 7  ;;  %v1293_v29 = vld [vmem:[%s1971_s4] ss:$0 sm:$0xff]  ;;  %v667_v4 = vand.u32 127, %v602_v26  ;;  %s1600_s13 = smov 64   ;;  %s1601_s25 = smov 96  }
 0x113   : > { %1377 = vmatprep.subr.bf16.mxu0 %v1595_v20  ;;  %1385 = vmatprep.mubr.msk.bf16.mxu1 %vm1596_vm2, %v1595_v20  ;;  %v596_v44 = vld [vmem:[#allocation4 + $0x10] sm:$0xff]  ;;  %v1297_v51 = vld [vmem:[%s1972_s5] ss:$0 sm:$0xff]  ;;  %vm691_vm6 = vcmask 123904   ;;  %vm801_vm7 = vcmask 130048   ;;  %vm1125_vm8 = vcmask 254976  }
 0x114   : > { %v601_v27 = vunpack.c.0.s8 %v600_v25  ;;  %v1800_v36 = vsub.s32 0, %v1793_v28  ;;  %v594_v40 = vld [vmem:[#allocation4] sm:$0xff]  ;;  %v672_v5 = vadd.s32 4294967288, %v667_v4  ;;  %v1815_v9 = vsub.s32 %v667_v4, %v1793_v28  ;;  %s1602_s30 = smov [#allocation5]  }
 0x115   : > { %v597_v45 = vld [vmem:[#allocation4 + $0x18] sm:$0xff]  ;;  %v702_v22 = vsub.s32 1, %v1793_v28  ;;  %s1534_s12 = sshll.u32 %s1602_s30, 4  ;;  %s1535_s12 = int_to_ptr.vmem [resolvable:$false] %s1534_s12 }
 0x116   : > { %1378 = vmatpush3.bf16.msra.mxu0 %v1489_v21  ;;  %v604_v30 = vsub.s32 %v601_v27, %v1793_v28  ;;  %v595_v41 = vld [vmem:[#allocation4 + $0x8] sm:$0xff]  ;;  %v1812_v7 = vsub.s32 %v672_v5, %v1793_v28  ;;  %v1598_v21 = vmov 0  }
 0x117   : > { %1395 = vmatprep.subr.bf16.mxu0 %v1595_v20  ;;  %1487 = vset.pattern.permute.xlu0 %v1598_v21 }
 0x118   : > { %1486 = vset.pattern.permute.xlu1 %v1598_v21 }
 0x119   : > { %1380 = vmatmul.mubr.msk.bf16.vlgmr.msra.gmra.mrb[0].mxu0 %vm550_vm3, %v1786_v23 }
 0x11a   : > { %1411 = vmatprep.mubr.msk.bf16.mxu0 %vm1596_vm2, %v1595_v20 }
 0x1ec   : > { %v588_v31 = vpop.f32.mrb[0].mxu0 }
 0x1ed   : > { %v589_v32 = vadd.f32 %v1293_v29, %v588_v31  ;;  %v1381_v33 = vpop.f32.mrb[1].mxu0 }
 0x1ee   : > { %v591_v34 = vpop.f32.mrb[2].mxu0 }
 0x1ef   : > { %v605_v35 = vrot.slane %v589_v32, %v604_v30  ;;  %v1382_v37 = vpop.f32.mrb[3].mxu0 }
 0x1f1   : > { %v606_v38 = vcombine.high %v605_v35, %v605_v35  ;;  %v613_v39 = vrot.slane %v605_v35, %v604_v30 }
 0x1f3   : > { %v620_v42 = vrot.slane %v606_v38, %v604_v30  ;;  %v624_v43 = vrot.slane %v613_v39, %v1800_v36 }
 0x1f5   : > { %v628_v46 = vrot.slane %v620_v42, %v1800_v36  ;;  %v631_v47 = vadd.f32 %v624_v43, %v594_v40  ;;  %v632_v48 = vadd.f32 %v624_v43, %v595_v41 }
 0x1f7   : > { %v633_v49 = vadd.f32 %v628_v46, %v596_v44  ;;  %v634_v50 = vadd.f32 %v628_v46, %v597_v45  ;;  %1502 = vtanh.f32 %v631_v47 }
 0x1f8   : > { %1504 = vtanh.f32 %v632_v48 }
 0x1f9   : > { %1506 = vtanh.f32 %v633_v49 }
 0x1fa   : > { %1508 = vtanh.f32 %v634_v50 }
 0x201   : > { %v1503_v52 = vpop.eup %1502 }
 0x202   : > { %v1505_v53 = vpop.eup %1504  ;;  %v646_v54 = vmul.f32 %v1503_v52, %v1297_v51 }
 0x203   : > { %v1507_v55 = vpop.eup %1506  ;;  %v647_v59 = vmul.f32 %v1505_v53, %v1297_v51 }
 0x204   : > { %v1509_v56 = vpop.eup %1508  ;;  %v650_v57 = vsel %vm550_vm3, %v646_v54, 0.0  ;;  %v648_v58 = vmul.f32 %v1507_v55, %v1297_v51 }
 0x205   : > { %651 = vadd.xlane.f32.xlu0 %v650_v57  ;;  %v649_v61 = vmul.f32 %v1509_v56, %v1297_v51  ;;  %v653_v62 = vsel %vm550_vm3, %v647_v59, 0.0 }
 0x206   : > { %v656_v60 = vsel %vm550_vm3, %v648_v58, 0.0 }
 0x207   : > { %657 = vadd.xlane.f32.xlu1 %v656_v60  ;;  %v659_v63 = vsel %vm550_vm3, %v649_v61, 0.0 }
 0x209   : > { %654 = vadd.xlane.f32.xlu0 %v653_v62 }
 0x20b   : > { %660 = vadd.xlane.f32.xlu1 %v659_v63 }
 0x292   : > { %v652_v6 = vpop.xlane.xlu0 %651 }
 0x293   : > { %v671_v13 = vrot.slane %v652_v6, %v1815_v9 }
 0x294   : > { %v658_v8 = vpop.xlane.xlu1 %657 }
 0x295   : > { %v682_v14 = vrot.slane %v658_v8, %v1815_v9 }
 0x296   : > { %v655_v10 = vpop.xlane.xlu0 %654 }
 0x297   : > { %v676_v11 = vrot.slane %v655_v10, %v1812_v7 }
 0x298   : > { %v661_v12 = vpop.xlane.xlu1 %660 }
 0x299   : > { %v686_v15 = vrot.slane %v661_v12, %v1812_v7  ;;  %v678_v16 = vsel %vm677_vm4, %v676_v11, %v671_v13 }
 0x29b   : > { %v687_v17 = vsel %vm677_vm4, %v686_v15, %v682_v14 }
 0x29c   : > { %v689_v18 = vsel %vm688_vm5, %v687_v17, %v678_v16  ;;  %v1300_v16 = vcombine.low %v1730_v2, %v1735_v3  ;;  %v1494_v2 = vld [vmem:[%s1973_s6 + $0x20] sm:$0xff]   ;;  %v1495_v3 = vld [vmem:[%s1973_s6 + $0x28] sm:$0xff]  }
 0x29d   : > { %v692_v19 = vsel %vm691_vm6, %v689_v18, -inf }
 0x29e   : > { %693 = vmax.xlane.f32.xlu0 %v692_v19 }
 0x32b   : > { %v694_v24 = vpop.xlane.xlu0 %693 }
 0x32c   : > { %v699_v25 = vrot.slane %v694_v24, %v1800_v36  ;;  %v703_v26 = vrot.slane %v694_v24, %v702_v22 }
 0x32e   : > { %v706_v27 = vsub.f32 %v652_v6, %v699_v25  ;;  %v707_v29 = vsub.f32 %v655_v10, %v699_v25  ;;  %v708_v30 = vsub.f32 %v658_v8, %v703_v26  ;;  %v709_v33 = vsub.f32 %v661_v12, %v703_v26  ;;  %v1490_v8 = vld [vmem:[%s1973_s6] sm:$0xff]   ;;  %v1491_v10 = vld [vmem:[%s1973_s6 + $0x8] sm:$0xff]  }
 0x32f   : > { %v1298_v6 = vcombine.low %v1716_v0, %v1721_v1  ;;  %1396 = vmatpush3.bf16.msra.mxu0 %v1490_v8  ;;  %v1492_v0 = vld [vmem:[%s1973_s6 + $0x10] sm:$0xff]   ;;  %v1493_v1 = vld [vmem:[%s1973_s6 + $0x18] sm:$0xff]   ;;  %v1498_v26 = vld [vmem:[%s1974_s7 + $0x8] sm:$0xff]  }
 0x330   : > { %v710_v31 = vmul.f32 1.442695, %v706_v27  ;;  %v712_v32 = vmul.f32 1.442695, %v707_v29  ;;  %v714_v34 = vmul.f32 1.442695, %v708_v30  ;;  %1397 = vmatprep.subr.bf16.mxu0 %v1595_v20 }
 0x331   : > { %v716_v35 = vmul.f32 1.442695, %v709_v33  ;;  %1384 = vmatpush3.bf16.msra.mxu1 %v1298_v6  ;;  %v1499_v27 = vld [vmem:[%s1973_s6 + $0x38] sm:$0xff]   ;;  %v525_v29 = vld [vmem:[#allocation3] sm:$0x3] }
 0x332   : > { %1510 = vpow2.f32 %v710_v31  ;;  %1389 = vmatprep.subr.bf16.mxu1 %v1595_v20  ;;  %v1500_v8 = vld [vmem:[%s1976_s9] sm:$0xff]  }
 0x333   : > { %1512 = vpow2.f32 %v712_v32  ;;  %1398 = vmatpush3.bf16.msra.mxu0 %v1491_v10  ;;  %v1501_v10 = vld [vmem:[%s1976_s9 + $0x8] sm:$0xff]  }
 0x334   : > { %1514 = vpow2.f32 %v714_v34  ;;  %1399 = vmatprep.subr.bf16.mxu0 %v1595_v20 }
 0x335   : > { %1516 = vpow2.f32 %v716_v35 }
 0x337   : > { %1400 = vmatpush3.bf16.msra.mxu0 %v1492_v0 }
 0x338   : > { %1401 = vmatprep.subr.bf16.mxu0 %v1595_v20 }
 0x33b   : > { %1402 = vmatpush3.bf16.msra.mxu0 %v1493_v1 }
 0x33c   : > { %v1511_v37 = vpop.eup %1510  ;;  %1403 = vmatprep.subr.bf16.mxu0 %v1595_v20 }
 0x33d   : > { %v1513_v38 = vpop.eup %1512  ;;  %723 = vperm.xlu1 %1486, %v1511_v37  }
 0x33e   : > { %726 = vperm.xlu0 %1487, %v1513_v38   ;;  %v1515_v28 = vpop.eup %1514 }
 0x33f   : > { %v1517_v39 = vpop.eup %1516  ;;  %1404 = vmatpush3.bf16.msra.mxu0 %v1494_v2 }
 0x340   : > { %1405 = vmatprep.subr.bf16.mxu0 %v1595_v20 }
 0x341   : > { %729 = vperm.xlu1 %1486, %v1515_v28  }
 0x343   : > { %1406 = vmatpush3.bf16.msra.mxu0 %v1495_v3 }
 0x344   : > { %1407 = vmatprep.subr.bf16.mxu0 %v1595_v20 }
 0x345   : > { %732 = vperm.xlu1 %1486, %v1517_v39  }
 0x3bc   : > { %v724_v40 = vpop.permute.xlu1 %723 }
 0x3bd   : > { %v727_v41 = vpop.permute.xlu0 %726  ;;  %v737_v44 = vrot.slane %v724_v40, %v1815_v9 }
 0x3be   : > { %v741_v43 = vrot.slane %v727_v41, %v1812_v7 }
 0x3c0   : > { %v730_v42 = vpop.permute.xlu1 %729  ;;  %v742_v48 = vsel %vm677_vm4, %v741_v43, %v737_v44 }
 0x3c1   : > { %v746_v46 = vrot.slane %v730_v42, %v1815_v9 }
 0x3c4   : > { %v733_v45 = vpop.permute.xlu1 %732 }
 0x3c5   : > { %v750_v47 = vrot.slane %v733_v45, %v1812_v7 }
 0x3c7   : > { %v751_v49 = vsel %vm677_vm4, %v750_v47, %v746_v46 }
 0x3c8   : > { %v752_v50 = vsel %vm688_vm5, %v751_v49, %v742_v48  ;;  %v931_v48 = vld [vmem:[%s1741_s14] sm:$0x3] }
 0x3c9   : > { %v754_v51 = vsel %vm691_vm6, %v752_v50, 0.0 }
 0x3ca   : > { %755 = vadd.xlane.f32.xlu1 %v754_v51 }
 0x457   : > { %v756_v52 = vpop.xlane.xlu1 %755 }
 0x458   : > { %v761_v53 = vrot.slane %v756_v52, %v1800_v36  ;;  %v765_v54 = vrot.slane %v756_v52, %v702_v22  ;;  %v1313_v52 = vld [vmem:[%s1975_s8] ss:$0 sm:$0xff] }
 0x45a   : > { %1518 = vrcp.f32 %v761_v53 }
 0x45b   : > { %1520 = vrcp.f32 %v765_v54 }
 0x464   : > { %v1519_v55 = vpop.eup %1518 }
 0x465   : > { %v769_v56 = vmul.f32 %v1519_v55, %v1511_v37  ;;  %v770_v57 = vmul.f32 %v1519_v55, %v1513_v38  ;;  %v1521_v58 = vpop.eup %1520 }
 0x466   : > { %v772_v61 = vmul.f32 %v1521_v58, %v1515_v28  ;;  %v773_v62 = vmul.f32 %v1521_v58, %v1517_v39 }
 0x467   : > { %v774_v59 = vpack.c.bf16 %v770_v57, %v769_v56 }
 0x468   : > { %v775_v4 = vpack.c.bf16 %v773_v62, %v772_v61 }
 0x469   : > { %v777_v60 = vunpack.c.l.b16 %v774_v59  ;;  %v778_v63 = vunpack.c.h.b16 %v774_v59 }
 0x46a   : > { %v846_v5 = vunpack.c.l.b16 %v775_v4  ;;  %v847_v36 = vunpack.c.h.b16 %v775_v4 }
 0x46b   : > { %780 = vperm.xlu0 %1487, %v777_v60  }
 0x46f   : > { %783 = vperm.xlu0 %1487, %v778_v63  }
 0x473   : > { %849 = vperm.xlu0 %1487, %v846_v5  }
 0x477   : > { %852 = vperm.xlu0 %1487, %v847_v36  }
 0x47b   : > { %1101 = vrot.lane.b32.xlu0 %v525_v29, %s1599_s26 }
 0x4ea   : > { %v781_v11 = vpop.permute.xlu0 %780 }
 0x4eb   : > { %v788_v13 = vrot.slane %v781_v11, %v1815_v9 }
 0x4ee   : > { %v784_v12 = vpop.permute.xlu0 %783 }
 0x4ef   : > { %v792_v14 = vrot.slane %v784_v12, %v1812_v7 }
 0x4f1   : > { %v793_v15 = vsel %vm677_vm4, %v792_v14, %v788_v13 }
 0x4f2   : > { %v794_v17 = vpack.c.b16 %v793_v15, %v793_v15  ;;  %v850_v18 = vpop.permute.xlu0 %849  ;;  %v1315_v15 = vld [vmem:[%s1977_s10] ss:$0 sm:$0xff] }
 0x4f3   : > { %v857_v21 = vrot.slane %v850_v18, %v1815_v9  ;;  %v1497_v9 = vld [vmem:[%s1973_s6 + $0x30] sm:$0xff]  }
 0x4f4   : > { %1386 = vmatmul.mubr.msk.bf16.vlgmr.msra.gmra.mrb[0].mxu1 %vm801_vm7, %v794_v17  ;;  %1408 = vmatpush3.bf16.msra.mxu0 %v1497_v9 }
 0x4f5   : > { %1390 = vmatpush3.bf16.msra.mxu1 %v1300_v16  ;;  %1391 = vmatprep.mubr.msk.bf16.mxu1 %vm1596_vm2, %v1595_v20 }
 0x4f6   : > { %v853_v19 = vpop.permute.xlu0 %852  ;;  %1415 = vmatprep.subr.bf16.mxu1 %v1595_v20  ;;  %1409 = vmatprep.subr.bf16.mxu0 %v1595_v20 }
 0x4f7   : > { %v861_v22 = vrot.slane %v853_v19, %v1812_v7  ;;  %v1496_v7 = vld [vmem:[%s1974_s7] sm:$0xff]  }
 0x4f8   : > { %1410 = vmatpush3.bf16.msra.mxu0 %v1499_v27 }
 0x4f9   : > { %v862_v24 = vsel %vm677_vm4, %v861_v22, %v857_v21 }
 0x4fa   : > { %v863_v25 = vpack.c.b16 %v862_v24, %v862_v24  ;;  %v1102_v4 = vpop.permute.xlu0 %1101 }
 0x4fc   : > { %1392 = vmatmul.mubr.msk.bf16.vlgmr.msra.gmra.mrb[4].mxu1 %vm801_vm7, %v863_v25 }
 0x4fd   : > { %1419 = vmatprep.mubr.msk.bf16.mxu1 %vm1596_vm2, %v1595_v20  ;;  %1416 = vmatpush3.bf16.msra.mxu1 %v1496_v7 }
 0x4fe   : > { %1417 = vmatprep.subr.bf16.mxu1 %v1595_v20 }
 0x501   : > { %1418 = vmatpush3.bf16.msra.mxu1 %v1498_v26 }
 0x502   : > { %1423 = vmatprep.subr.bf16.mxu1 %v1595_v20 }
 0x504   : > { %1420 = vmatmul.mubr.msk.bf16.vlgmr.msra.gmra.mrb[8].mxu1 %vm550_vm3, %v1786_v23 }
 0x505   : > { %1427 = vmatprep.mubr.msk.bf16.mxu1 %vm1596_vm2, %v1595_v20  ;;  %1424 = vmatpush3.bf16.msra.mxu1 %v1500_v8 }
 0x506   : > { %1425 = vmatprep.subr.bf16.mxu1 %v1595_v20 }
 0x509   : > { %1426 = vmatpush3.bf16.msra.mxu1 %v1501_v10 }
 0x5c7   : > { %v839_v30 = vpop.f32.mrb[0].mxu1 }
 0x5c8   : > { %v1387_v31 = vpop.f32.mrb[1].mxu1  ;;  %v913_v35 = vpack.c.bf16 %v839_v30, %v839_v30 }
 0x5c9   : > { %v842_v32 = vpop.f32.mrb[2].mxu1 }
 0x5ca   : > { %v1388_v33 = vpop.f32.mrb[3].mxu1  ;;  %v934_v41 = vunpack.c.l.b16 %v913_v35 }
 0x5cf   : > { %v907_v34 = vpop.f32.mrb[4].mxu1 }
 0x5d0   : > { %v914_v37 = vpack.c.bf16 %v907_v34, %v907_v34  ;;  %v1393_v38 = vpop.f32.mrb[5].mxu1 }
 0x5d1   : > { %v910_v28 = vpop.f32.mrb[6].mxu1 }
 0x5d2   : > { %v935_v39 = vunpack.c.l.b16 %v914_v37  ;;  %v1394_v40 = vpop.f32.mrb[7].mxu1 }
 0x5d4   : > { %v936_v42 = vrot.slane %v935_v39, 7 }
 0x5d6   : > { %v937_v43 = vsel %vm688_vm5, %v936_v42, %v934_v41 }
 0x5d7   : > { %v938_v23 = vpack.c.b16 %v937_v43, %v937_v43  ;;  %v1078_v44 = vpop.f32.mrb[8].mxu1 }
 0x5d8   : > { %v1421_v45 = vpop.f32.mrb[9].mxu1 }
 0x5d9   : > { %1412 = vmatmul.mubr.bf16.vlgmr.msra.gmra.mrb[4].mxu0 %v938_v23  ;;  %v1081_v46 = vpop.f32.mrb[10].mxu1 }
 0x5da   : > { %v1422_v47 = vpop.f32.mrb[11].mxu1 }
 0x6ac   : > { %v1022_v49 = vpop.f32.mrb[4].mxu0 }
 0x6ad   : > { %v1023_v50 = vadd.f32 %v1022_v49, %v931_v48  ;;  %v1413_v51 = vpop.f32.mrb[5].mxu0 }
 0x6ae   : > { %v1025_v53 = vpop.f32.mrb[6].mxu0 }
 0x6af   : > { %v1084_v54 = vadd.f32 %v1078_v44, %v1023_v50  ;;  %v1414_v55 = vpop.f32.mrb[7].mxu0 }
 0x6b1   : > { %v1092_v56 = vadd.f32 %v1313_v52, %v1084_v54 }
 0x6b3   : > { %1522 = vtanh.f32 %v1092_v56  ;;  %v1314_v58 = vmul.f32 -1.442695, %v1092_v56 }
 0x6b5   : > { %1524 = vpow2.f32 %v1314_v58 }
 0x6bd   : > { %v1523_v57 = vpop.eup %1522 }
 0x6be   : > { %1106 = vrot.lane.b32.xlu1 %v1523_v57, %s1600_s13 }
 0x6bf   : > { %v1525_v59 = vpop.eup %1524 }
 0x6c0   : > { %v1096_v60 = vadd.f32 1.0, %v1525_v59 }
 0x6c2   : > { %1526 = vrcp.f32 %v1096_v60 }
 0x6cc   : > { %v1527_v61 = vpop.eup %1526 }
 0x6cd   : > { %v1104_v5 = vmul.f32 %v1527_v61, %v1102_v4 }
 0x730   : > { %v1107_v62 = vpop.permute.xlu1 %1106 }
 0x731   : > { %v1109_v63 = vmul.f32 %v1527_v61, %v1107_v62 }
 0x733   : > { %1111 = vrot.lane.b32.xlu0 %v1109_v63, %s1599_s26 }
 0x7a5   : > { %v1112_v6 = vpop.permute.xlu0 %1111 }
 0x7a6   : > { %v1114_v36 = vadd.f32 %v1112_v6, %v1104_v5 }
 0x7a8   : > { %1528 = vtanh.f32 %v1114_v36 }
 0x7b2   : > { %v1529_v0 = vpop.eup %1528 }
 0x7b3   : > { %1117 = vrot.lane.b32.xlu0 %v1529_v0, %s1600_s13  ;;  %s1320_s13 = sshll.u32 %s1684_s21, 5  ;;  %s1983_s21 = sand.u32 1, %s1584_s18  }
 0x7b4   : > { %s1921_s22 = scalar_lea.hbm %s1978_s11, %s1320_s13  ;;  %s1204_s24 = scalar_lea.sflag [#allocation6], %s1983_s21 }
 0x7b5   : > { %s1536_s13 = scalar_lea.vmem %s1535_s12, 64 }
 0x825   : > { %v1118_v1 = vpop.permute.xlu0 %1117 }
 0x826   : > { %v1120_v11 = vmul.f32 %v1527_v61, %v1118_v1 }
 0x828   : > { %v1132_v12 = vpack.c.bf16 %v1120_v11, %v1120_v11  ;;  %1122 = vrot.lane.b32.xlu1 %v1120_v11, %s1599_s26 }
 0x82a   : > { %1145 = vrot.lane.b32.xlu0 %v1132_v12, %s1599_s26  ;;  %s1217_s26 = sshll.u32 %s377_s29, 4  ;;  %s1923_s26 = int_to_ptr.vmem [resolvable:$true] %s1217_s26 }
 0x82b   : > { %p1537_p1 = scmp.lt.s32.totalorder %s1923_s26, %s1535_s12 }
 0x82e   : > { %1128 = vrot.lane.b32.xlu0 %v1114_v36, %s1601_s25  ;;  %s1530_s25 = scalar_lea.vmem %s1923_s26, 32 }
 0x82f   : > { %p1531_p12 = scmp.ne.s32.totalorder %s1923_s26, %s1530_s25  ;;  %p1538_p2 = scmp.lt.s32.totalorder %s1536_s13, %s1530_s25 }
 0x831   : > { %p1532_p13 = pnand %p1531_p12, %p1701_p5  ;;  %p1539_p3 = por %p1538_p2, %p1537_p1 }
 0x833   : > { %p1533_p0 = pneg %p1532_p13 }
 0x835   : > { %p1540_p4 = pnand %p1539_p3, %p1533_p0 }
 0x89a   : > { %v1123_v13 = vpop.permute.xlu1 %1122 }
 0x89b   : > { %1126 = vst.msk [vmem:[#allocation2] sm:$0x3] %vm1125_vm8, %v1123_v13 }
 0x89c   : > { %v1146_v20 = vpop.permute.xlu0 %1145 }
 0x89d   : > { %1428 = vmatmul.mubr.msk.bf16.vlgmr.msra.gmra.mrb[12].mxu1 %vm550_vm3, %v1146_v20 }
 0x8a0   : > { %v1129_v14 = vpop.permute.xlu0 %1128 }
 0x8a1   : > { %1131 = vst.msk [vmem:[#allocation3] sm:$0x3] %vm1125_vm8, %v1129_v14 }
 0x970   : > { %v1196_v16 = vpop.f32.mrb[12].mxu1 }
 0x971   : > { %v1197_v17 = vadd.f32 %v1315_v15, %v1196_v16  ;;  %v1429_v18 = vpop.f32.mrb[13].mxu1 }
 0x972   : > { %v1199_v19 = vpop.f32.mrb[14].mxu1 }
 0x973   : > { %1202 = vst [vmem:[%s377_s29] sm:$0x3] %v1197_v17  ;;  %v1430_v21 = vpop.f32.mrb[15].mxu1 }
 0x974   : > { %1543 = shalt.err (!%p1540_p4)
}
 0x975   : > { %s1544_s29 = scalar_lea.hbm %s1921_s22, 32  ;;  %s1548_s16 = scalar_lea.hbm %s1978_s11, 288 }
 0x976   : > { %p1545_p7 = scmp.ne.s32.totalorder %s1921_s22, %s1544_s29  ;;  %p1549_p10 = scmp.lt.u32.totalorder %s1921_s22, %s1978_s11 }
 0x977   : > { %p1550_p11 = scmp.lt.u32.totalorder %s1548_s16, %s1544_s29  ;;  %p1552_p13 = scmp.lt.u32.totalorder %s1544_s29, %s1921_s22 }
 0x978   : > { %p1546_p8 = pnand %p1545_p7, %p1701_p5 }
 0x979   : > { %p1551_p12 = por %p1550_p11, %p1549_p10 }
 0x97a   : > { %p1547_p9 = pneg %p1546_p8 }
 0x97b   : > { %p1553_p0 = por %p1552_p13, %p1551_p12 }
 0x97d   : > { %p1554_p1 = pnand %p1553_p0, %p1547_p9 }
 0x97f   : > { %1557 = shalt.err (!%p1554_p1)
}
 0x980   : > { %1431 = dma.vmem_to_hbm [thread:$0]  (%p1701_p5), %s1923_s26, 32, %s1921_s22, %s1204_s24  }
 0x981 PF: > { %p1437_p2 = scmp.ge.s32.totalorder %s1592_s20, 2  ;;  %s1229_s25 = sand.u32 1, %s1580_s17  }
 0x982   : > { %s1230_s12 = scalar_lea.sflag [#allocation6], %s1229_s25 }
 0x983   : > { %p1434_p3 = pnand %p1437_p2, %p1705_p6 }
 0x985   : > { %1575 = dma.done.wait (!%p1434_p3), %s1230_s12, 32  }
 0x986   : > { %1577 = vsyncadd (!%p1434_p3), %s1230_s12, 4294967264  ;;  %s1984_s13 = sld [smem:[#allocation8_spill]]  ;;  %p21_p4 = scmp.ge.s32.totalorder %s1688_s23, 11  }
 0x987   : > { %s1985_s17 = smov %s1584_s18  ;;  %s1986_s18 = smov %s1588_s19 }
 0x988   : > { %s1988_s20 = smov %s1688_s23  ;;  %23 = sbr.rel (!%p21_p4) target bundleno = 3 (0x3), region = 103 }
 0x98c   : > { %s1987_s19 = smov %s1984_s13 }
 0x98f   :  { %1235 = vsyncpa [#allocation6], 1 }
 0x990   :  { %1237 = vsyncpa [#allocation6 + $0x1], 1 }

</bundles_post_ra>
